<compile_context>
chip_gen: v6e
topology: v6e:2x2x1
jax: 0.10.0
libtpu: 0.0.40
codegen_flags: <defaults>
</compile_context>

<pallas_src>
import functools

import jax
import jax.numpy as jnp
import numpy as np
from jax.experimental import pallas as pl
from jax.experimental.pallas import tpu as pltpu


# ----------------------------- Pallas kernel -------------------------------
def encoder_layer_kernel(
    x_ref, cross_ref,
    wq_s_ref, wkv_s_ref, wo_s_ref,
    wq_c_ref, wkv_c_ref, wo_c_ref,
    w1_ref, w2_ref,
    vecd_ref, vec2_ref, bc1_ref,
    o_ref,
    *, n_heads, l_tile,
):
    f32 = jnp.float32
    bf16 = jnp.bfloat16

    # query rows of this L-tile, sliced out of the resident full-L block
    li = pl.program_id(1)
    row0 = pl.multiple_of(li * l_tile, l_tile)

    xkv = x_ref[0].astype(f32)                          # (L, D)  full seq (self-attn K/V)
    xq = x_ref[0, pl.ds(row0, l_tile), :].astype(f32)   # (tL, D) query rows
    cr = cross_ref[0].astype(f32)                       # (S, D)  cross sequence
    vec = vecd_ref[...]                                 # (16, D) packed D-wide vectors (f32)
    vec2 = vec2_ref[...]                                # (2, 2D) packed fused K/V biases
    bc1 = bc1_ref[...]                                  # (1, DFF)

    D = xkv.shape[-1]
    dh = D // n_heads
    scale = 1.0 / float(np.sqrt(dh))

    # unpack the small-vector slab (rows fixed by the wrapper)
    bq_s, bo_s = vec[0:1], vec[1:2]
    bq_c, bo_c = vec[2:3], vec[3:4]
    g1, be1 = vec[4:5], vec[5:6]
    g2, be2 = vec[6:7], vec[7:8]
    g3, be3 = vec[8:9], vec[9:10]
    bc2 = vec[10:11]
    bkv_s, bkv_c = vec2[0:1], vec2[1:2]

    def layernorm(v, g, b, eps=1e-5):
        mu = jnp.mean(v, axis=-1, keepdims=True)
        d = v - mu
        var = jnp.mean(d * d, axis=-1, keepdims=True)
        return d * jax.lax.rsqrt(var + eps) * g + b

    def mdot(a, w_ref):
        # bf16 MXU inputs (weights pre-cast host-side), f32 accumulation.
        return jnp.dot(a.astype(bf16), w_ref[...], preferred_element_type=f32)

    def split_heads(t):
        # (N, H*dh) -> (H, N, dh) via lane slices + leading-axis concat
        # (cheap layout ops; all matmuls stay head-batched on the MXU).
        n = t.shape[0]
        parts = [t[:, h * dh:(h + 1) * dh].reshape(1, n, dh)
                 for h in range(n_heads)]
        return jnp.concatenate(parts, axis=0)

    def merge_heads(t):
        # (H, N, dh) -> (N, H*dh), lane-dense
        return jnp.concatenate([t[h] for h in range(n_heads)], axis=-1)

    def mha(q_in, kv_in, wq_ref, wkv_ref, wo_ref, bq, bkv, bo):
        # scale folded into Q once; K/V projection fused into one matmul.
        q = (mdot(q_in, wq_ref) + bq) * scale          # (tL, D)   f32
        kv = mdot(kv_in, wkv_ref) + bkv                # (S, 2D)   f32
        qh = split_heads(q)                            # (H, tL, dh)
        kh = split_heads(kv[:, :D])                    # (H, S, dh)
        vh = split_heads(kv[:, D:])                    # (H, S, dh)
        # head-batched contractions (batch leading, contraction on last dims)
        s = jnp.einsum('hqd,hkd->hqk',
                       qh.astype(bf16), kh.astype(bf16),
                       preferred_element_type=f32)     # (H, tL, S)
        s = s - jnp.max(s, axis=-1, keepdims=True)
        p = jnp.exp(s)
        p = p * pl.reciprocal(jnp.sum(p, axis=-1, keepdims=True), approx=True)
        o = jnp.einsum('hqk,hkd->hqd',
                       p.astype(bf16), vh.astype(bf16),
                       preferred_element_type=f32)     # (H, tL, dh)
        return mdot(merge_heads(o), wo_ref) + bo       # (tL, D)

    # x = norm1(x + self_attn(x, x, x))        (dropout == identity)
    x = xq + mha(xq, xkv, wq_s_ref, wkv_s_ref, wo_s_ref, bq_s, bkv_s, bo_s)
    x = layernorm(x, g1, be1)
    # x = norm2(x + cross_attn(x, cross, cross))
    x = x + mha(x, cr, wq_c_ref, wkv_c_ref, wo_c_ref, bq_c, bkv_c, bo_c)
    x = layernorm(x, g2, be2)
    # FFN: conv1(k=1) -> relu -> conv2(k=1)  (pointwise linears over d_model)
    h = jnp.maximum(mdot(x, w1_ref) + bc1, 0.0)
    y = mdot(h, w2_ref) + bc2
    # return norm3(x + y)
    o_ref[0] = layernorm(x + y, g3, be3).astype(o_ref.dtype)


# ------------------------------ JAX wrapper ---------------------------------
def _choose_l_tile(L):
    for t in (256, 128):
        if L % t == 0:
            return t
    return L


def encoder_layer_w_cross_attn(x, cross, params, n_heads, l_tile=None):
    B, L, D = x.shape
    _, S, _ = cross.shape
    DFF = params["w1"].shape[1]

    if l_tile is None:
        l_tile = _choose_l_tile(L)
    assert L % l_tile == 0
    num_l = L // l_tile

    bf16, f32 = jnp.bfloat16, jnp.float32

    # ---- host-side packing: fused K/V weights, bf16 matmul weights,
    #      all small vectors packed into two slabs (fewer DMA descriptors) ----
    wq_s = params["wq_s"].astype(bf16)
    wkv_s = jnp.concatenate([params["wk_s"], params["wv_s"]], axis=1).astype(bf16)
    wo_s = params["wo_s"].astype(bf16)
    wq_c = params["wq_c"].astype(bf16)
    wkv_c = jnp.concatenate([params["wk_c"], params["wv_c"]], axis=1).astype(bf16)
    wo_c = params["wo_c"].astype(bf16)
    w1 = params["w1"].astype(bf16)
    w2 = params["w2"].astype(bf16)

    rows = [params[k].astype(f32) for k in
            ("bq_s", "bo_s", "bq_c", "bo_c",
             "g1", "be1", "g2", "be2", "g3", "be3", "bc2")]
    vecd = jnp.concatenate(rows + [jnp.zeros((16 - len(rows), D), f32)], axis=0)
    vec2 = jnp.concatenate(
        [jnp.concatenate([params["bk_s"], params["bv_s"]], axis=1),
         jnp.concatenate([params["bk_c"], params["bv_c"]], axis=1)], axis=0)
    bc1 = params["bc1"].astype(f32)

    weights = [wq_s, wkv_s, wo_s, wq_c, wkv_c, wo_c, w1, w2, vecd, vec2, bc1]

    in_specs = [
        # full sequence once per batch (index constant across the l axis ->
        # Pallas skips re-fetching between consecutive l steps)
        pl.BlockSpec((1, L, D), lambda b, l: (b, 0, 0)),
        pl.BlockSpec((1, S, D), lambda b, l: (b, 0, 0)),       # cross K/V
    ] + [pl.BlockSpec(w.shape, lambda b, l: (0, 0)) for w in weights]

    out_specs = pl.BlockSpec((1, l_tile, D), lambda b, l: (b, l, 0))

    # advisory cost estimate
    flops_step = (
        2 * l_tile * D * D + 2 * L * D * (2 * D) + 4 * l_tile * L * D
        + 2 * l_tile * D * D                                   # self attn
        + 2 * l_tile * D * D + 2 * S * D * (2 * D) + 4 * l_tile * S * D
        + 2 * l_tile * D * D                                   # cross attn
        + 4 * l_tile * D * DFF                                 # FFN
    )
    trans_step = n_heads * l_tile * (L + S)
    bytes_step = 4 * D * (l_tile + L + S) + sum(
        int(np.prod(w.shape)) * w.dtype.itemsize for w in weights)
    cost = pl.CostEstimate(
        flops=int(B * num_l * flops_step),
        transcendentals=int(B * num_l * trans_step),
        bytes_accessed=int(B * num_l * bytes_step),
    )

    kernel = functools.partial(encoder_layer_kernel, n_heads=n_heads,
                               l_tile=l_tile)

    return pl.pallas_call(
        kernel,
        out_shape=jax.ShapeDtypeStruct((B, L, D), x.dtype),
        grid_spec=pltpu.PrefetchScalarGridSpec(
            num_scalar_prefetch=0,
            grid=(B, num_l),
            in_specs=in_specs,
            out_specs=out_specs,
        ),
        compiler_params=pltpu.CompilerParams(
            dimension_semantics=("parallel", "parallel"),
            vmem_limit_bytes=64 * 1024 * 1024,
        ),
        cost_estimate=cost,
    )(x, cross, *weights)


# ------------------------- deterministic parameters -------------------------
def make_params(key, D, DFF):
    keys = iter(jax.random.split(key, 40))

    def lin(kin, kout):
        w = jax.random.normal(next(keys), (kin, kout), jnp.float32) / np.sqrt(kin)
        b = 0.01 * jax.random.normal(next(keys), (1, kout), jnp.float32)
        return w, b

    p = {}
    for suf in ("s", "c"):                 # self / cross attention projections
        for name in ("q", "k", "v", "o"):
            w, b = lin(D, D)
            p[f"w{name}_{suf}"] = w
            p[f"b{name}_{suf}"] = b
    for i in (1, 2, 3):                    # LayerNorm affine params
        p[f"g{i}"] = jnp.ones((1, D), jnp.float32)
        p[f"be{i}"] = jnp.zeros((1, D), jnp.float32)
    p["w1"], p["bc1"] = lin(D, DFF)        # conv1 (k=1): d_model -> d_ff
    p["w2"], p["bc2"] = lin(DFF, D)        # conv2 (k=1): d_ff -> d_model
    return p


# ------------------------------ JAX reference --------------------------------
def reference(x, cross, p, n_heads):
    def mha(q_in, kv_in, wq, bq, wk, bk, wv, bv, wo, bo):
        B, L, D = q_in.shape
        S = kv_in.shape[1]
        dh = D // n_heads
        q = (q_in @ wq + bq).reshape(B, L, n_heads, dh)
        k = (kv_in @ wk + bk).reshape(B, S, n_heads, dh)
        v = (kv_in @ wv + bv).reshape(B, S, n_heads, dh)
        s = jnp.einsum("blhd,bshd->bhls", q, k) / np.sqrt(dh)
        a = jax.nn.softmax(s, axis=-1)
        o = jnp.einsum("bhls,bshd->blhd", a, v).reshape(B, L, D)
        return o @ wo + bo

    def ln(v, g, b):
        mu = jnp.mean(v, -1, keepdims=True)
        var = jnp.mean((v - mu) ** 2, -1, keepdims=True)
        return (v - mu) * jax.lax.rsqrt(var + 1e-5) * g + b

    x = x + mha(x, x, p["wq_s"], p["bq_s"], p["wk_s"], p["bk_s"],
                p["wv_s"], p["bv_s"], p["wo_s"], p["bo_s"])
    x = ln(x, p["g1"], p["be1"])
    x = x + mha(x, cross, p["wq_c"], p["bq_c"], p["wk_c"], p["bk_c"],
                p["wv_c"], p["bv_c"], p["wo_c"], p["bo_c"])
    x = ln(x, p["g2"], p["be2"])
    h = jnp.maximum(x @ p["w1"] + p["bc1"], 0.0)
    y = h @ p["w2"] + p["bc2"]
    return ln(x + y, p["g3"], p["be3"])


if __name__ == "__main__":
    B, L, S, D, H, DFF = 2, 8, 8, 32, 4, 64
    key = jax.random.PRNGKey(0)
    kx, kc, kp = jax.random.split(key, 3)
    x = jax.random.normal(kx, (B, L, D), jnp.float32)
    cross = jax.random.normal(kc, (B, S, D), jnp.float32)
    params = make_params(kp, D, DFF)

    out = encoder_layer_w_cross_attn(x, cross, params, n_heads=H)
    out = jax.block_until_ready(out)

    ref = reference(x, cross, params, n_heads=H)
    np.testing.assert_allclose(np.asarray(out), np.asarray(ref),
                               rtol=2e-2, atol=2e-2)
    print("KERNEL_OK")
</pallas_src>

<mosaic_0001>
module attributes {stable_mosaic.version = 11 : i64} {
  func.func @encoder_layer_kernel(%arg0: i32, %arg1: i32, %arg2: memref<1x8x32xf32, #tpu.memory_space<vmem>>, %arg3: memref<1x8x32xf32, #tpu.memory_space<vmem>>, %arg4: memref<32x32xbf16, #tpu.memory_space<vmem>>, %arg5: memref<32x64xbf16, #tpu.memory_space<vmem>>, %arg6: memref<32x32xbf16, #tpu.memory_space<vmem>>, %arg7: memref<32x32xbf16, #tpu.memory_space<vmem>>, %arg8: memref<32x64xbf16, #tpu.memory_space<vmem>>, %arg9: memref<32x32xbf16, #tpu.memory_space<vmem>>, %arg10: memref<32x64xbf16, #tpu.memory_space<vmem>>, %arg11: memref<64x32xbf16, #tpu.memory_space<vmem>>, %arg12: memref<16x32xf32, #tpu.memory_space<vmem>>, %arg13: memref<2x64xf32, #tpu.memory_space<vmem>>, %arg14: memref<1x64xf32, #tpu.memory_space<vmem>>, %arg15: memref<1x8x32xf32, #tpu.memory_space<vmem>>) attributes {dimension_semantics = [#tpu.dimension_semantics<parallel>, #tpu.dimension_semantics<parallel>], iteration_bounds = array<i64: 2, 1>, scalar_prefetch = 0 : i64, scratch_operands = 0 : i64, tpu.core_type = #tpu.core_type<tc>, window_params = [{transform_indices = @transform_0, window_bounds = array<i64: 1, 8, 32>}, {transform_indices = @transform_1, window_bounds = array<i64: 1, 8, 32>}, {pipeline_mode = #tpu.pipeline_mode<synchronous>, transform_indices = @transform_2, window_bounds = array<i64: 32, 32>}, {pipeline_mode = #tpu.pipeline_mode<synchronous>, transform_indices = @transform_3, window_bounds = array<i64: 32, 64>}, {pipeline_mode = #tpu.pipeline_mode<synchronous>, transform_indices = @transform_4, window_bounds = array<i64: 32, 32>}, {pipeline_mode = #tpu.pipeline_mode<synchronous>, transform_indices = @transform_5, window_bounds = array<i64: 32, 32>}, {pipeline_mode = #tpu.pipeline_mode<synchronous>, transform_indices = @transform_6, window_bounds = array<i64: 32, 64>}, {pipeline_mode = #tpu.pipeline_mode<synchronous>, transform_indices = @transform_7, window_bounds = array<i64: 32, 32>}, {pipeline_mode = #tpu.pipeline_mode<synchronous>, transform_indices = @transform_8, window_bounds = array<i64: 32, 64>}, {pipeline_mode = #tpu.pipeline_mode<synchronous>, transform_indices = @transform_9, window_bounds = array<i64: 64, 32>}, {pipeline_mode = #tpu.pipeline_mode<synchronous>, transform_indices = @transform_10, window_bounds = array<i64: 16, 32>}, {pipeline_mode = #tpu.pipeline_mode<synchronous>, transform_indices = @transform_11, window_bounds = array<i64: 2, 64>}, {pipeline_mode = #tpu.pipeline_mode<synchronous>, transform_indices = @transform_12, window_bounds = array<i64: 1, 64>}, {transform_indices = @transform_13, window_bounds = array<i64: 1, 8, 32>}]} {
    %c8_i32 = arith.constant 8 : i32
    %0 = arith.muli %arg1, %c8_i32 : i32
    %1 = tpu.assume_multiple %0, 8 : i32
    %c0 = arith.constant 0 : index
    %c0_0 = arith.constant 0 : index
    %c0_1 = arith.constant 0 : index
    %2 = vector.load %arg2[%c0, %c0_0, %c0_1] : memref<1x8x32xf32, #tpu.memory_space<vmem>>, vector<1x8x32xf32>
    %3 = vector.shape_cast %2 : vector<1x8x32xf32> to vector<8x32xf32>
    %c0_2 = arith.constant 0 : index
    %4 = arith.index_cast %1 : i32 to index
    %c0_3 = arith.constant 0 : index
    %5 = vector.load %arg2[%c0_2, %4, %c0_3] : memref<1x8x32xf32, #tpu.memory_space<vmem>>, vector<1x8x32xf32>
    %6 = vector.shape_cast %5 : vector<1x8x32xf32> to vector<8x32xf32>
    %c0_4 = arith.constant 0 : index
    %c0_5 = arith.constant 0 : index
    %c0_6 = arith.constant 0 : index
    %7 = vector.load %arg3[%c0_4, %c0_5, %c0_6] : memref<1x8x32xf32, #tpu.memory_space<vmem>>, vector<1x8x32xf32>
    %8 = vector.shape_cast %7 : vector<1x8x32xf32> to vector<8x32xf32>
    %c0_7 = arith.constant 0 : index
    %c0_8 = arith.constant 0 : index
    %9 = vector.load %arg12[%c0_7, %c0_8] : memref<16x32xf32, #tpu.memory_space<vmem>>, vector<16x32xf32>
    %c0_9 = arith.constant 0 : index
    %c0_10 = arith.constant 0 : index
    %10 = vector.load %arg13[%c0_9, %c0_10] : memref<2x64xf32, #tpu.memory_space<vmem>>, vector<2x64xf32>
    %c0_11 = arith.constant 0 : index
    %c0_12 = arith.constant 0 : index
    %11 = vector.load %arg14[%c0_11, %c0_12] : memref<1x64xf32, #tpu.memory_space<vmem>>, vector<1x64xf32>
    %12 = vector.extract_strided_slice %9 {offsets = [0, 0], sizes = [1, 32], strides = [1, 1]} : vector<16x32xf32> to vector<1x32xf32>
    %13 = vector.extract_strided_slice %9 {offsets = [1, 0], sizes = [1, 32], strides = [1, 1]} : vector<16x32xf32> to vector<1x32xf32>
    %14 = vector.extract_strided_slice %9 {offsets = [2, 0], sizes = [1, 32], strides = [1, 1]} : vector<16x32xf32> to vector<1x32xf32>
    %15 = vector.extract_strided_slice %9 {offsets = [3, 0], sizes = [1, 32], strides = [1, 1]} : vector<16x32xf32> to vector<1x32xf32>
    %16 = vector.extract_strided_slice %9 {offsets = [4, 0], sizes = [1, 32], strides = [1, 1]} : vector<16x32xf32> to vector<1x32xf32>
    %17 = vector.extract_strided_slice %9 {offsets = [5, 0], sizes = [1, 32], strides = [1, 1]} : vector<16x32xf32> to vector<1x32xf32>
    %18 = vector.extract_strided_slice %9 {offsets = [6, 0], sizes = [1, 32], strides = [1, 1]} : vector<16x32xf32> to vector<1x32xf32>
    %19 = vector.extract_strided_slice %9 {offsets = [7, 0], sizes = [1, 32], strides = [1, 1]} : vector<16x32xf32> to vector<1x32xf32>
    %20 = vector.extract_strided_slice %9 {offsets = [8, 0], sizes = [1, 32], strides = [1, 1]} : vector<16x32xf32> to vector<1x32xf32>
    %21 = vector.extract_strided_slice %9 {offsets = [9, 0], sizes = [1, 32], strides = [1, 1]} : vector<16x32xf32> to vector<1x32xf32>
    %22 = vector.extract_strided_slice %9 {offsets = [10, 0], sizes = [1, 32], strides = [1, 1]} : vector<16x32xf32> to vector<1x32xf32>
    %23 = vector.extract_strided_slice %10 {offsets = [0, 0], sizes = [1, 64], strides = [1, 1]} : vector<2x64xf32> to vector<1x64xf32>
    %24 = vector.extract_strided_slice %10 {offsets = [1, 0], sizes = [1, 64], strides = [1, 1]} : vector<2x64xf32> to vector<1x64xf32>
    %25 = arith.truncf %6 : vector<8x32xf32> to vector<8x32xbf16>
    %c0_13 = arith.constant 0 : index
    %c0_14 = arith.constant 0 : index
    %26 = vector.load %arg4[%c0_13, %c0_14] : memref<32x32xbf16, #tpu.memory_space<vmem>>, vector<32x32xbf16>
    %cst = arith.constant dense<0.000000e+00> : vector<8x32xf32>
    %27 = tpu.matmul %25, %26, %cst {dimension_numbers = #tpu.dot_dimension_numbers<[1], [0], [0], [1], [0, 0, 1, 1], [], []>} : vector<8x32xbf16>, vector<32x32xbf16>, vector<8x32xf32> -> vector<8x32xf32>
    %28 = vector.broadcast %12 : vector<1x32xf32> to vector<8x32xf32>
    %29 = arith.addf %27, %28 : vector<8x32xf32>
    %cst_15 = arith.constant 0.353553385 : f32
    %30 = vector.broadcast %cst_15 : f32 to vector<8x32xf32>
    %31 = arith.mulf %29, %30 : vector<8x32xf32>
    %32 = arith.truncf %3 : vector<8x32xf32> to vector<8x32xbf16>
    %c0_16 = arith.constant 0 : index
    %c0_17 = arith.constant 0 : index
    %33 = vector.load %arg5[%c0_16, %c0_17] : memref<32x64xbf16, #tpu.memory_space<vmem>>, vector<32x64xbf16>
    %cst_18 = arith.constant dense<0.000000e+00> : vector<8x64xf32>
    %34 = tpu.matmul %32, %33, %cst_18 {dimension_numbers = #tpu.dot_dimension_numbers<[1], [0], [0], [1], [0, 0, 1, 1], [], []>} : vector<8x32xbf16>, vector<32x64xbf16>, vector<8x64xf32> -> vector<8x64xf32>
    %35 = vector.broadcast %23 : vector<1x64xf32> to vector<8x64xf32>
    %36 = arith.addf %34, %35 : vector<8x64xf32>
    %37 = vector.extract_strided_slice %31 {offsets = [0, 0], sizes = [8, 8], strides = [1, 1]} : vector<8x32xf32> to vector<8x8xf32>
    %38 = vector.shape_cast %37 : vector<8x8xf32> to vector<1x8x8xf32>
    %39 = vector.extract_strided_slice %31 {offsets = [0, 8], sizes = [8, 8], strides = [1, 1]} : vector<8x32xf32> to vector<8x8xf32>
    %40 = vector.shape_cast %39 : vector<8x8xf32> to vector<1x8x8xf32>
    %41 = vector.extract_strided_slice %31 {offsets = [0, 16], sizes = [8, 8], strides = [1, 1]} : vector<8x32xf32> to vector<8x8xf32>
    %42 = vector.shape_cast %41 : vector<8x8xf32> to vector<1x8x8xf32>
    %43 = vector.extract_strided_slice %31 {offsets = [0, 24], sizes = [8, 8], strides = [1, 1]} : vector<8x32xf32> to vector<8x8xf32>
    %44 = vector.shape_cast %43 : vector<8x8xf32> to vector<1x8x8xf32>
    %45 = tpu.concatenate %38, %40, %42, %44 in 0 : vector<1x8x8xf32>, vector<1x8x8xf32>, vector<1x8x8xf32>, vector<1x8x8xf32> -> vector<4x8x8xf32>
    %46 = vector.extract_strided_slice %36 {offsets = [0, 0], sizes = [8, 32], strides = [1, 1]} : vector<8x64xf32> to vector<8x32xf32>
    %47 = vector.extract_strided_slice %46 {offsets = [0, 0], sizes = [8, 8], strides = [1, 1]} : vector<8x32xf32> to vector<8x8xf32>
    %48 = vector.shape_cast %47 : vector<8x8xf32> to vector<1x8x8xf32>
    %49 = vector.extract_strided_slice %46 {offsets = [0, 8], sizes = [8, 8], strides = [1, 1]} : vector<8x32xf32> to vector<8x8xf32>
    %50 = vector.shape_cast %49 : vector<8x8xf32> to vector<1x8x8xf32>
    %51 = vector.extract_strided_slice %46 {offsets = [0, 16], sizes = [8, 8], strides = [1, 1]} : vector<8x32xf32> to vector<8x8xf32>
    %52 = vector.shape_cast %51 : vector<8x8xf32> to vector<1x8x8xf32>
    %53 = vector.extract_strided_slice %46 {offsets = [0, 24], sizes = [8, 8], strides = [1, 1]} : vector<8x32xf32> to vector<8x8xf32>
    %54 = vector.shape_cast %53 : vector<8x8xf32> to vector<1x8x8xf32>
    %55 = tpu.concatenate %48, %50, %52, %54 in 0 : vector<1x8x8xf32>, vector<1x8x8xf32>, vector<1x8x8xf32>, vector<1x8x8xf32> -> vector<4x8x8xf32>
    %56 = vector.extract_strided_slice %36 {offsets = [0, 32], sizes = [8, 32], strides = [1, 1]} : vector<8x64xf32> to vector<8x32xf32>
    %57 = vector.extract_strided_slice %56 {offsets = [0, 0], sizes = [8, 8], strides = [1, 1]} : vector<8x32xf32> to vector<8x8xf32>
    %58 = vector.shape_cast %57 : vector<8x8xf32> to vector<1x8x8xf32>
    %59 = vector.extract_strided_slice %56 {offsets = [0, 8], sizes = [8, 8], strides = [1, 1]} : vector<8x32xf32> to vector<8x8xf32>
    %60 = vector.shape_cast %59 : vector<8x8xf32> to vector<1x8x8xf32>
    %61 = vector.extract_strided_slice %56 {offsets = [0, 16], sizes = [8, 8], strides = [1, 1]} : vector<8x32xf32> to vector<8x8xf32>
    %62 = vector.shape_cast %61 : vector<8x8xf32> to vector<1x8x8xf32>
    %63 = vector.extract_strided_slice %56 {offsets = [0, 24], sizes = [8, 8], strides = [1, 1]} : vector<8x32xf32> to vector<8x8xf32>
    %64 = vector.shape_cast %63 : vector<8x8xf32> to vector<1x8x8xf32>
    %65 = tpu.concatenate %58, %60, %62, %64 in 0 : vector<1x8x8xf32>, vector<1x8x8xf32>, vector<1x8x8xf32>, vector<1x8x8xf32> -> vector<4x8x8xf32>
    %66 = arith.truncf %45 : vector<4x8x8xf32> to vector<4x8x8xbf16>
    %67 = arith.truncf %55 : vector<4x8x8xf32> to vector<4x8x8xbf16>
    "tpu.trace_start"() <{level = 10 : i32, message = "hqd,hkd->hqk"}> : () -> ()
    %cst_19 = arith.constant dense<0.000000e+00> : vector<4x8x8xf32>
    %68 = tpu.matmul %66, %67, %cst_19 {dimension_numbers = #tpu.dot_dimension_numbers<[2], [2], [1], [1], [0, 0, 0, 1, 1, 1], [0], [0]>} : vector<4x8x8xbf16>, vector<4x8x8xbf16>, vector<4x8x8xf32> -> vector<4x8x8xf32>
    "tpu.trace_stop"() : () -> ()
    %cst_20 = arith.constant dense<0xFF800000> : vector<4x8xf32>
    %69 = vector.multi_reduction <maximumf>, %68, %cst_20 [2] : vector<4x8x8xf32> to vector<4x8xf32>
    %70 = vector.shape_cast %69 : vector<4x8xf32> to vector<4x8x1xf32>
    %71 = vector.broadcast %70 : vector<4x8x1xf32> to vector<4x8x8xf32>
    %72 = arith.subf %68, %71 : vector<4x8x8xf32>
    %73 = math.exp %72 : vector<4x8x8xf32>
    %cst_21 = arith.constant dense<0.000000e+00> : vector<4x8xf32>
    %74 = vector.multi_reduction <add>, %73, %cst_21 [2] : vector<4x8x8xf32> to vector<4x8xf32>
    %75 = vector.shape_cast %74 : vector<4x8xf32> to vector<4x8x1xf32>
    %76 = tpu.reciprocal %75 {approx = true} : vector<4x8x1xf32> -> vector<4x8x1xf32>
    %77 = vector.broadcast %76 : vector<4x8x1xf32> to vector<4x8x8xf32>
    %78 = arith.mulf %73, %77 : vector<4x8x8xf32>
    %79 = arith.truncf %78 : vector<4x8x8xf32> to vector<4x8x8xbf16>
    %80 = arith.truncf %65 : vector<4x8x8xf32> to vector<4x8x8xbf16>
    "tpu.trace_start"() <{level = 10 : i32, message = "hqk,hkd->hqd"}> : () -> ()
    %cst_22 = arith.constant dense<0.000000e+00> : vector<4x8x8xf32>
    %81 = tpu.matmul %79, %80, %cst_22 {dimension_numbers = #tpu.dot_dimension_numbers<[2], [1], [1], [2], [0, 0, 0, 1, 1, 2], [0], [0]>} : vector<4x8x8xbf16>, vector<4x8x8xbf16>, vector<4x8x8xf32> -> vector<4x8x8xf32>
    "tpu.trace_stop"() : () -> ()
    %82 = vector.extract_strided_slice %81 {offsets = [0, 0, 0], sizes = [1, 8, 8], strides = [1, 1, 1]} : vector<4x8x8xf32> to vector<1x8x8xf32>
    %83 = vector.shape_cast %82 : vector<1x8x8xf32> to vector<8x8xf32>
    %84 = vector.extract_strided_slice %81 {offsets = [1, 0, 0], sizes = [1, 8, 8], strides = [1, 1, 1]} : vector<4x8x8xf32> to vector<1x8x8xf32>
    %85 = vector.shape_cast %84 : vector<1x8x8xf32> to vector<8x8xf32>
    %86 = vector.extract_strided_slice %81 {offsets = [2, 0, 0], sizes = [1, 8, 8], strides = [1, 1, 1]} : vector<4x8x8xf32> to vector<1x8x8xf32>
    %87 = vector.shape_cast %86 : vector<1x8x8xf32> to vector<8x8xf32>
    %88 = vector.extract_strided_slice %81 {offsets = [3, 0, 0], sizes = [1, 8, 8], strides = [1, 1, 1]} : vector<4x8x8xf32> to vector<1x8x8xf32>
    %89 = vector.shape_cast %88 : vector<1x8x8xf32> to vector<8x8xf32>
    %90 = tpu.concatenate %83, %85, %87, %89 in 1 : vector<8x8xf32>, vector<8x8xf32>, vector<8x8xf32>, vector<8x8xf32> -> vector<8x32xf32>
    %91 = arith.truncf %90 : vector<8x32xf32> to vector<8x32xbf16>
    %c0_23 = arith.constant 0 : index
    %c0_24 = arith.constant 0 : index
    %92 = vector.load %arg6[%c0_23, %c0_24] : memref<32x32xbf16, #tpu.memory_space<vmem>>, vector<32x32xbf16>
    %cst_25 = arith.constant dense<0.000000e+00> : vector<8x32xf32>
    %93 = tpu.matmul %91, %92, %cst_25 {dimension_numbers = #tpu.dot_dimension_numbers<[1], [0], [0], [1], [0, 0, 1, 1], [], []>} : vector<8x32xbf16>, vector<32x32xbf16>, vector<8x32xf32> -> vector<8x32xf32>
    %94 = vector.broadcast %13 : vector<1x32xf32> to vector<8x32xf32>
    %95 = arith.addf %93, %94 : vector<8x32xf32>
    %96 = arith.addf %6, %95 : vector<8x32xf32>
    %cst_26 = arith.constant dense<0.000000e+00> : vector<8xf32>
    %97 = vector.multi_reduction <add>, %96, %cst_26 [1] : vector<8x32xf32> to vector<8xf32>
    %98 = vector.shape_cast %97 : vector<8xf32> to vector<8x1xf32>
    %cst_27 = arith.constant 3.200000e+01 : f32
    %99 = vector.broadcast %cst_27 : f32 to vector<8x1xf32>
    %100 = arith.divf %98, %99 : vector<8x1xf32>
    %101 = vector.broadcast %100 : vector<8x1xf32> to vector<8x32xf32>
    %102 = arith.subf %96, %101 : vector<8x32xf32>
    %103 = arith.mulf %102, %102 : vector<8x32xf32>
    %cst_28 = arith.constant dense<0.000000e+00> : vector<8xf32>
    %104 = vector.multi_reduction <add>, %103, %cst_28 [1] : vector<8x32xf32> to vector<8xf32>
    %105 = vector.shape_cast %104 : vector<8xf32> to vector<8x1xf32>
    %cst_29 = arith.constant 3.200000e+01 : f32
    %106 = vector.broadcast %cst_29 : f32 to vector<8x1xf32>
    %107 = arith.divf %105, %106 : vector<8x1xf32>
    %cst_30 = arith.constant 9.99999974E-6 : f32
    %108 = vector.broadcast %cst_30 : f32 to vector<8x1xf32>
    %109 = arith.addf %107, %108 : vector<8x1xf32>
    %110 = math.rsqrt %109 : vector<8x1xf32>
    %111 = vector.broadcast %110 : vector<8x1xf32> to vector<8x32xf32>
    %112 = arith.mulf %102, %111 : vector<8x32xf32>
    %113 = vector.broadcast %16 : vector<1x32xf32> to vector<8x32xf32>
    %114 = arith.mulf %112, %113 : vector<8x32xf32>
    %115 = vector.broadcast %17 : vector<1x32xf32> to vector<8x32xf32>
    %116 = arith.addf %114, %115 : vector<8x32xf32>
    %117 = arith.truncf %116 : vector<8x32xf32> to vector<8x32xbf16>
    %c0_31 = arith.constant 0 : index
    %c0_32 = arith.constant 0 : index
    %118 = vector.load %arg7[%c0_31, %c0_32] : memref<32x32xbf16, #tpu.memory_space<vmem>>, vector<32x32xbf16>
    %cst_33 = arith.constant dense<0.000000e+00> : vector<8x32xf32>
    %119 = tpu.matmul %117, %118, %cst_33 {dimension_numbers = #tpu.dot_dimension_numbers<[1], [0], [0], [1], [0, 0, 1, 1], [], []>} : vector<8x32xbf16>, vector<32x32xbf16>, vector<8x32xf32> -> vector<8x32xf32>
    %120 = vector.broadcast %14 : vector<1x32xf32> to vector<8x32xf32>
    %121 = arith.addf %119, %120 : vector<8x32xf32>
    %cst_34 = arith.constant 0.353553385 : f32
    %122 = vector.broadcast %cst_34 : f32 to vector<8x32xf32>
    %123 = arith.mulf %121, %122 : vector<8x32xf32>
    %124 = arith.truncf %8 : vector<8x32xf32> to vector<8x32xbf16>
    %c0_35 = arith.constant 0 : index
    %c0_36 = arith.constant 0 : index
    %125 = vector.load %arg8[%c0_35, %c0_36] : memref<32x64xbf16, #tpu.memory_space<vmem>>, vector<32x64xbf16>
    %cst_37 = arith.constant dense<0.000000e+00> : vector<8x64xf32>
    %126 = tpu.matmul %124, %125, %cst_37 {dimension_numbers = #tpu.dot_dimension_numbers<[1], [0], [0], [1], [0, 0, 1, 1], [], []>} : vector<8x32xbf16>, vector<32x64xbf16>, vector<8x64xf32> -> vector<8x64xf32>
    %127 = vector.broadcast %24 : vector<1x64xf32> to vector<8x64xf32>
    %128 = arith.addf %126, %127 : vector<8x64xf32>
    %129 = vector.extract_strided_slice %123 {offsets = [0, 0], sizes = [8, 8], strides = [1, 1]} : vector<8x32xf32> to vector<8x8xf32>
    %130 = vector.shape_cast %129 : vector<8x8xf32> to vector<1x8x8xf32>
    %131 = vector.extract_strided_slice %123 {offsets = [0, 8], sizes = [8, 8], strides = [1, 1]} : vector<8x32xf32> to vector<8x8xf32>
    %132 = vector.shape_cast %131 : vector<8x8xf32> to vector<1x8x8xf32>
    %133 = vector.extract_strided_slice %123 {offsets = [0, 16], sizes = [8, 8], strides = [1, 1]} : vector<8x32xf32> to vector<8x8xf32>
    %134 = vector.shape_cast %133 : vector<8x8xf32> to vector<1x8x8xf32>
    %135 = vector.extract_strided_slice %123 {offsets = [0, 24], sizes = [8, 8], strides = [1, 1]} : vector<8x32xf32> to vector<8x8xf32>
    %136 = vector.shape_cast %135 : vector<8x8xf32> to vector<1x8x8xf32>
    %137 = tpu.concatenate %130, %132, %134, %136 in 0 : vector<1x8x8xf32>, vector<1x8x8xf32>, vector<1x8x8xf32>, vector<1x8x8xf32> -> vector<4x8x8xf32>
    %138 = vector.extract_strided_slice %128 {offsets = [0, 0], sizes = [8, 32], strides = [1, 1]} : vector<8x64xf32> to vector<8x32xf32>
    %139 = vector.extract_strided_slice %138 {offsets = [0, 0], sizes = [8, 8], strides = [1, 1]} : vector<8x32xf32> to vector<8x8xf32>
    %140 = vector.shape_cast %139 : vector<8x8xf32> to vector<1x8x8xf32>
    %141 = vector.extract_strided_slice %138 {offsets = [0, 8], sizes = [8, 8], strides = [1, 1]} : vector<8x32xf32> to vector<8x8xf32>
    %142 = vector.shape_cast %141 : vector<8x8xf32> to vector<1x8x8xf32>
    %143 = vector.extract_strided_slice %138 {offsets = [0, 16], sizes = [8, 8], strides = [1, 1]} : vector<8x32xf32> to vector<8x8xf32>
    %144 = vector.shape_cast %143 : vector<8x8xf32> to vector<1x8x8xf32>
    %145 = vector.extract_strided_slice %138 {offsets = [0, 24], sizes = [8, 8], strides = [1, 1]} : vector<8x32xf32> to vector<8x8xf32>
    %146 = vector.shape_cast %145 : vector<8x8xf32> to vector<1x8x8xf32>
    %147 = tpu.concatenate %140, %142, %144, %146 in 0 : vector<1x8x8xf32>, vector<1x8x8xf32>, vector<1x8x8xf32>, vector<1x8x8xf32> -> vector<4x8x8xf32>
    %148 = vector.extract_strided_slice %128 {offsets = [0, 32], sizes = [8, 32], strides = [1, 1]} : vector<8x64xf32> to vector<8x32xf32>
    %149 = vector.extract_strided_slice %148 {offsets = [0, 0], sizes = [8, 8], strides = [1, 1]} : vector<8x32xf32> to vector<8x8xf32>
    %150 = vector.shape_cast %149 : vector<8x8xf32> to vector<1x8x8xf32>
    %151 = vector.extract_strided_slice %148 {offsets = [0, 8], sizes = [8, 8], strides = [1, 1]} : vector<8x32xf32> to vector<8x8xf32>
    %152 = vector.shape_cast %151 : vector<8x8xf32> to vector<1x8x8xf32>
    %153 = vector.extract_strided_slice %148 {offsets = [0, 16], sizes = [8, 8], strides = [1, 1]} : vector<8x32xf32> to vector<8x8xf32>
    %154 = vector.shape_cast %153 : vector<8x8xf32> to vector<1x8x8xf32>
    %155 = vector.extract_strided_slice %148 {offsets = [0, 24], sizes = [8, 8], strides = [1, 1]} : vector<8x32xf32> to vector<8x8xf32>
    %156 = vector.shape_cast %155 : vector<8x8xf32> to vector<1x8x8xf32>
    %157 = tpu.concatenate %150, %152, %154, %156 in 0 : vector<1x8x8xf32>, vector<1x8x8xf32>, vector<1x8x8xf32>, vector<1x8x8xf32> -> vector<4x8x8xf32>
    %158 = arith.truncf %137 : vector<4x8x8xf32> to vector<4x8x8xbf16>
    %159 = arith.truncf %147 : vector<4x8x8xf32> to vector<4x8x8xbf16>
    "tpu.trace_start"() <{level = 10 : i32, message = "hqd,hkd->hqk"}> : () -> ()
    %cst_38 = arith.constant dense<0.000000e+00> : vector<4x8x8xf32>
    %160 = tpu.matmul %158, %159, %cst_38 {dimension_numbers = #tpu.dot_dimension_numbers<[2], [2], [1], [1], [0, 0, 0, 1, 1, 1], [0], [0]>} : vector<4x8x8xbf16>, vector<4x8x8xbf16>, vector<4x8x8xf32> -> vector<4x8x8xf32>
    "tpu.trace_stop"() : () -> ()
    %cst_39 = arith.constant dense<0xFF800000> : vector<4x8xf32>
    %161 = vector.multi_reduction <maximumf>, %160, %cst_39 [2] : vector<4x8x8xf32> to vector<4x8xf32>
    %162 = vector.shape_cast %161 : vector<4x8xf32> to vector<4x8x1xf32>
    %163 = vector.broadcast %162 : vector<4x8x1xf32> to vector<4x8x8xf32>
    %164 = arith.subf %160, %163 : vector<4x8x8xf32>
    %165 = math.exp %164 : vector<4x8x8xf32>
    %cst_40 = arith.constant dense<0.000000e+00> : vector<4x8xf32>
    %166 = vector.multi_reduction <add>, %165, %cst_40 [2] : vector<4x8x8xf32> to vector<4x8xf32>
    %167 = vector.shape_cast %166 : vector<4x8xf32> to vector<4x8x1xf32>
    %168 = tpu.reciprocal %167 {approx = true} : vector<4x8x1xf32> -> vector<4x8x1xf32>
    %169 = vector.broadcast %168 : vector<4x8x1xf32> to vector<4x8x8xf32>
    %170 = arith.mulf %165, %169 : vector<4x8x8xf32>
    %171 = arith.truncf %170 : vector<4x8x8xf32> to vector<4x8x8xbf16>
    %172 = arith.truncf %157 : vector<4x8x8xf32> to vector<4x8x8xbf16>
    "tpu.trace_start"() <{level = 10 : i32, message = "hqk,hkd->hqd"}> : () -> ()
    %cst_41 = arith.constant dense<0.000000e+00> : vector<4x8x8xf32>
    %173 = tpu.matmul %171, %172, %cst_41 {dimension_numbers = #tpu.dot_dimension_numbers<[2], [1], [1], [2], [0, 0, 0, 1, 1, 2], [0], [0]>} : vector<4x8x8xbf16>, vector<4x8x8xbf16>, vector<4x8x8xf32> -> vector<4x8x8xf32>
    "tpu.trace_stop"() : () -> ()
    %174 = vector.extract_strided_slice %173 {offsets = [0, 0, 0], sizes = [1, 8, 8], strides = [1, 1, 1]} : vector<4x8x8xf32> to vector<1x8x8xf32>
    %175 = vector.shape_cast %174 : vector<1x8x8xf32> to vector<8x8xf32>
    %176 = vector.extract_strided_slice %173 {offsets = [1, 0, 0], sizes = [1, 8, 8], strides = [1, 1, 1]} : vector<4x8x8xf32> to vector<1x8x8xf32>
    %177 = vector.shape_cast %176 : vector<1x8x8xf32> to vector<8x8xf32>
    %178 = vector.extract_strided_slice %173 {offsets = [2, 0, 0], sizes = [1, 8, 8], strides = [1, 1, 1]} : vector<4x8x8xf32> to vector<1x8x8xf32>
    %179 = vector.shape_cast %178 : vector<1x8x8xf32> to vector<8x8xf32>
    %180 = vector.extract_strided_slice %173 {offsets = [3, 0, 0], sizes = [1, 8, 8], strides = [1, 1, 1]} : vector<4x8x8xf32> to vector<1x8x8xf32>
    %181 = vector.shape_cast %180 : vector<1x8x8xf32> to vector<8x8xf32>
    %182 = tpu.concatenate %175, %177, %179, %181 in 1 : vector<8x8xf32>, vector<8x8xf32>, vector<8x8xf32>, vector<8x8xf32> -> vector<8x32xf32>
    %183 = arith.truncf %182 : vector<8x32xf32> to vector<8x32xbf16>
    %c0_42 = arith.constant 0 : index
    %c0_43 = arith.constant 0 : index
    %184 = vector.load %arg9[%c0_42, %c0_43] : memref<32x32xbf16, #tpu.memory_space<vmem>>, vector<32x32xbf16>
    %cst_44 = arith.constant dense<0.000000e+00> : vector<8x32xf32>
    %185 = tpu.matmul %183, %184, %cst_44 {dimension_numbers = #tpu.dot_dimension_numbers<[1], [0], [0], [1], [0, 0, 1, 1], [], []>} : vector<8x32xbf16>, vector<32x32xbf16>, vector<8x32xf32> -> vector<8x32xf32>
    %186 = vector.broadcast %15 : vector<1x32xf32> to vector<8x32xf32>
    %187 = arith.addf %185, %186 : vector<8x32xf32>
    %188 = arith.addf %116, %187 : vector<8x32xf32>
    %cst_45 = arith.constant dense<0.000000e+00> : vector<8xf32>
    %189 = vector.multi_reduction <add>, %188, %cst_45 [1] : vector<8x32xf32> to vector<8xf32>
    %190 = vector.shape_cast %189 : vector<8xf32> to vector<8x1xf32>
    %cst_46 = arith.constant 3.200000e+01 : f32
    %191 = vector.broadcast %cst_46 : f32 to vector<8x1xf32>
    %192 = arith.divf %190, %191 : vector<8x1xf32>
    %193 = vector.broadcast %192 : vector<8x1xf32> to vector<8x32xf32>
    %194 = arith.subf %188, %193 : vector<8x32xf32>
    %195 = arith.mulf %194, %194 : vector<8x32xf32>
    %cst_47 = arith.constant dense<0.000000e+00> : vector<8xf32>
    %196 = vector.multi_reduction <add>, %195, %cst_47 [1] : vector<8x32xf32> to vector<8xf32>
    %197 = vector.shape_cast %196 : vector<8xf32> to vector<8x1xf32>
    %cst_48 = arith.constant 3.200000e+01 : f32
    %198 = vector.broadcast %cst_48 : f32 to vector<8x1xf32>
    %199 = arith.divf %197, %198 : vector<8x1xf32>
    %cst_49 = arith.constant 9.99999974E-6 : f32
    %200 = vector.broadcast %cst_49 : f32 to vector<8x1xf32>
    %201 = arith.addf %199, %200 : vector<8x1xf32>
    %202 = math.rsqrt %201 : vector<8x1xf32>
    %203 = vector.broadcast %202 : vector<8x1xf32> to vector<8x32xf32>
    %204 = arith.mulf %194, %203 : vector<8x32xf32>
    %205 = vector.broadcast %18 : vector<1x32xf32> to vector<8x32xf32>
    %206 = arith.mulf %204, %205 : vector<8x32xf32>
    %207 = vector.broadcast %19 : vector<1x32xf32> to vector<8x32xf32>
    %208 = arith.addf %206, %207 : vector<8x32xf32>
    %209 = arith.truncf %208 : vector<8x32xf32> to vector<8x32xbf16>
    %c0_50 = arith.constant 0 : index
    %c0_51 = arith.constant 0 : index
    %210 = vector.load %arg10[%c0_50, %c0_51] : memref<32x64xbf16, #tpu.memory_space<vmem>>, vector<32x64xbf16>
    %cst_52 = arith.constant dense<0.000000e+00> : vector<8x64xf32>
    %211 = tpu.matmul %209, %210, %cst_52 {dimension_numbers = #tpu.dot_dimension_numbers<[1], [0], [0], [1], [0, 0, 1, 1], [], []>} : vector<8x32xbf16>, vector<32x64xbf16>, vector<8x64xf32> -> vector<8x64xf32>
    %212 = vector.broadcast %11 : vector<1x64xf32> to vector<8x64xf32>
    %213 = arith.addf %211, %212 : vector<8x64xf32>
    %cst_53 = arith.constant 0.000000e+00 : f32
    %214 = vector.broadcast %cst_53 : f32 to vector<8x64xf32>
    %215 = arith.maximumf %213, %214 : vector<8x64xf32>
    %216 = arith.truncf %215 : vector<8x64xf32> to vector<8x64xbf16>
    %c0_54 = arith.constant 0 : index
    %c0_55 = arith.constant 0 : index
    %217 = vector.load %arg11[%c0_54, %c0_55] : memref<64x32xbf16, #tpu.memory_space<vmem>>, vector<64x32xbf16>
    %cst_56 = arith.constant dense<0.000000e+00> : vector<8x32xf32>
    %218 = tpu.matmul %216, %217, %cst_56 {dimension_numbers = #tpu.dot_dimension_numbers<[1], [0], [0], [1], [0, 0, 1, 1], [], []>} : vector<8x64xbf16>, vector<64x32xbf16>, vector<8x32xf32> -> vector<8x32xf32>
    %219 = vector.broadcast %22 : vector<1x32xf32> to vector<8x32xf32>
    %220 = arith.addf %218, %219 : vector<8x32xf32>
    %221 = arith.addf %208, %220 : vector<8x32xf32>
    %cst_57 = arith.constant dense<0.000000e+00> : vector<8xf32>
    %222 = vector.multi_reduction <add>, %221, %cst_57 [1] : vector<8x32xf32> to vector<8xf32>
    %223 = vector.shape_cast %222 : vector<8xf32> to vector<8x1xf32>
    %cst_58 = arith.constant 3.200000e+01 : f32
    %224 = vector.broadcast %cst_58 : f32 to vector<8x1xf32>
    %225 = arith.divf %223, %224 : vector<8x1xf32>
    %226 = vector.broadcast %225 : vector<8x1xf32> to vector<8x32xf32>
    %227 = arith.subf %221, %226 : vector<8x32xf32>
    %228 = arith.mulf %227, %227 : vector<8x32xf32>
    %cst_59 = arith.constant dense<0.000000e+00> : vector<8xf32>
    %229 = vector.multi_reduction <add>, %228, %cst_59 [1] : vector<8x32xf32> to vector<8xf32>
    %230 = vector.shape_cast %229 : vector<8xf32> to vector<8x1xf32>
    %cst_60 = arith.constant 3.200000e+01 : f32
    %231 = vector.broadcast %cst_60 : f32 to vector<8x1xf32>
    %232 = arith.divf %230, %231 : vector<8x1xf32>
    %cst_61 = arith.constant 9.99999974E-6 : f32
    %233 = vector.broadcast %cst_61 : f32 to vector<8x1xf32>
    %234 = arith.addf %232, %233 : vector<8x1xf32>
    %235 = math.rsqrt %234 : vector<8x1xf32>
    %236 = vector.broadcast %235 : vector<8x1xf32> to vector<8x32xf32>
    %237 = arith.mulf %227, %236 : vector<8x32xf32>
    %238 = vector.broadcast %20 : vector<1x32xf32> to vector<8x32xf32>
    %239 = arith.mulf %237, %238 : vector<8x32xf32>
    %240 = vector.broadcast %21 : vector<1x32xf32> to vector<8x32xf32>
    %241 = arith.addf %239, %240 : vector<8x32xf32>
    %c0_62 = arith.constant 0 : index
    %c0_63 = arith.constant 0 : index
    %c0_64 = arith.constant 0 : index
    %242 = vector.load %arg15[%c0_62, %c0_63, %c0_64] : memref<1x8x32xf32, #tpu.memory_space<vmem>>, vector<1x8x32xf32>
    %243 = vector.shape_cast %242 : vector<1x8x32xf32> to vector<8x32xf32>
    %244 = vector.shape_cast %241 : vector<8x32xf32> to vector<1x8x32xf32>
    tpu.vector_store %arg15[%c0_62, %c0_63, %c0_64], %244 {strides = array<i32>} : memref<1x8x32xf32, #tpu.memory_space<vmem>>, vector<1x8x32xf32>,
    return
  }
  func.func @transform_0(%arg0: i32, %arg1: i32) -> (i32, i32, i32) {
    %c0_i32 = arith.constant 0 : i32
    %c0_i32_0 = arith.constant 0 : i32
    %c0_i32_1 = arith.constant 0 : i32
    return %arg0, %c0_i32, %c0_i32_0 : i32, i32, i32
  }
  func.func @transform_1(%arg0: i32, %arg1: i32) -> (i32, i32, i32) {
    %c0_i32 = arith.constant 0 : i32
    %c0_i32_0 = arith.constant 0 : i32
    %c0_i32_1 = arith.constant 0 : i32
    return %arg0, %c0_i32, %c0_i32_0 : i32, i32, i32
  }
  func.func @transform_2(%arg0: i32, %arg1: i32) -> (i32, i32) {
    %c0_i32 = arith.constant 0 : i32
    %c0_i32_0 = arith.constant 0 : i32
    %c0_i32_1 = arith.constant 0 : i32
    return %c0_i32, %c0_i32_0 : i32, i32
  }
  func.func @transform_3(%arg0: i32, %arg1: i32) -> (i32, i32) {
    %c0_i32 = arith.constant 0 : i32
    %c0_i32_0 = arith.constant 0 : i32
    %c0_i32_1 = arith.constant 0 : i32
    return %c0_i32, %c0_i32_0 : i32, i32
  }
  func.func @transform_4(%arg0: i32, %arg1: i32) -> (i32, i32) {
    %c0_i32 = arith.constant 0 : i32
    %c0_i32_0 = arith.constant 0 : i32
    %c0_i32_1 = arith.constant 0 : i32
    return %c0_i32, %c0_i32_0 : i32, i32
  }
  func.func @transform_5(%arg0: i32, %arg1: i32) -> (i32, i32) {
    %c0_i32 = arith.constant 0 : i32
    %c0_i32_0 = arith.constant 0 : i32
    %c0_i32_1 = arith.constant 0 : i32
    return %c0_i32, %c0_i32_0 : i32, i32
  }
  func.func @transform_6(%arg0: i32, %arg1: i32) -> (i32, i32) {
    %c0_i32 = arith.constant 0 : i32
    %c0_i32_0 = arith.constant 0 : i32
    %c0_i32_1 = arith.constant 0 : i32
    return %c0_i32, %c0_i32_0 : i32, i32
  }
  func.func @transform_7(%arg0: i32, %arg1: i32) -> (i32, i32) {
    %c0_i32 = arith.constant 0 : i32
    %c0_i32_0 = arith.constant 0 : i32
    %c0_i32_1 = arith.constant 0 : i32
    return %c0_i32, %c0_i32_0 : i32, i32
  }
  func.func @transform_8(%arg0: i32, %arg1: i32) -> (i32, i32) {
    %c0_i32 = arith.constant 0 : i32
    %c0_i32_0 = arith.constant 0 : i32
    %c0_i32_1 = arith.constant 0 : i32
    return %c0_i32, %c0_i32_0 : i32, i32
  }
  func.func @transform_9(%arg0: i32, %arg1: i32) -> (i32, i32) {
    %c0_i32 = arith.constant 0 : i32
    %c0_i32_0 = arith.constant 0 : i32
    %c0_i32_1 = arith.constant 0 : i32
    return %c0_i32, %c0_i32_0 : i32, i32
  }
  func.func @transform_10(%arg0: i32, %arg1: i32) -> (i32, i32) {
    %c0_i32 = arith.constant 0 : i32
    %c0_i32_0 = arith.constant 0 : i32
    %c0_i32_1 = arith.constant 0 : i32
    return %c0_i32, %c0_i32_0 : i32, i32
  }
  func.func @transform_11(%arg0: i32, %arg1: i32) -> (i32, i32) {
    %c0_i32 = arith.constant 0 : i32
    %c0_i32_0 = arith.constant 0 : i32
    %c0_i32_1 = arith.constant 0 : i32
    return %c0_i32, %c0_i32_0 : i32, i32
  }
  func.func @transform_12(%arg0: i32, %arg1: i32) -> (i32, i32) {
    %c0_i32 = arith.constant 0 : i32
    %c0_i32_0 = arith.constant 0 : i32
    %c0_i32_1 = arith.constant 0 : i32
    return %c0_i32, %c0_i32_0 : i32, i32
  }
  func.func @transform_13(%arg0: i32, %arg1: i32) -> (i32, i32, i32) {
    %c0_i32 = arith.constant 0 : i32
    %c0_i32_0 = arith.constant 0 : i32
    return %arg0, %arg1, %c0_i32 : i32, i32, i32
  }
}

</mosaic_0001>

<bundles_post_ra>
// kernel: tpu_custom_call.1
= control target key start
LH: loop header
LB: loop body
LE: loop exit
PB: predicated region body
PF: predicated region fallthrough
CT: control target
= control target key end

     0   :  { %s3649_s0 = inlined_call_operand.vmem [shape: f32[2,8,32], index: 0, kind: input, shape index: {}]   ;;  %s3650_s1 = inlined_call_operand.vmem [shape: f32[2,8,32], index: 1, kind: input, shape index: {}]   ;;  %s3651_s2 = inlined_call_operand.vmem [shape: bf16[32,32], index: 2, kind: input, shape index: {}]   ;;  %s3652_s3 = inlined_call_operand.hbm [shape: bf16[32,64], index: 3, kind: input, shape index: {}]   ;;  %s3653_s4 = inlined_call_operand.hbm [shape: bf16[32,32], index: 4, kind: input, shape index: {}]   ;;  %s3654_s5 = inlined_call_operand.hbm [shape: bf16[32,32], index: 5, kind: input, shape index: {}]   ;;  %s3655_s6 = inlined_call_operand.hbm [shape: bf16[32,64], index: 6, kind: input, shape index: {}]   ;;  %s3656_s7 = inlined_call_operand.hbm [shape: bf16[32,32], index: 7, kind: input, shape index: {}]   ;;  %s3657_s8 = inlined_call_operand.hbm [shape: bf16[32,64], index: 8, kind: input, shape index: {}]   ;;  %s3658_s9 = inlined_call_operand.vmem [shape: bf16[64,32], index: 9, kind: input, shape index: {}]   ;;  %s3659_s10 = inlined_call_operand.hbm [shape: f32[16,32], index: 10, kind: input, shape index: {}]   ;;  %s3660_s11 = inlined_call_operand.vmem [shape: f32[2,64], index: 11, kind: input, shape index: {}]   ;;  %s3661_s12 = inlined_call_operand.vmem [shape: f32[1,64], index: 12, kind: input, shape index: {}]   ;;  %s3662_s13 = inlined_call_operand.hbm [shape: f32[2,8,32], index: 13, kind: output, shape index: {}]  }
   0x1   :  { %3669 = sst [smem:[#allocation26_spill]] %s3652_s3 }
   0x2   :  { %3670 = sst [smem:[#allocation27_spill]] %s3653_s4 }
   0x3   :  { %18 = vsyncpa [#allocation3], 0 }
   0x4   :  { %19 = vsyncpa [#allocation6], 0 }
   0x5   :  { %20 = vsyncpa [#allocation9], 0 }
   0x6   :  { %21 = vsyncpa [#allocation12], 0 }
   0x7   :  { %22 = vsyncpa [#allocation4], 0 }
   0x8   :  { %24 = vsyncpa [#allocation4 + $0x1], 0  ;;  %s3153_s25 = smov 0   ;;  %s3155_s26 = smov 0  }
   0x9   :  { %s3157_s27 = smov 0   ;;  %s3159_s28 = smov 0  }
   0xa   :  { %s3161_s29 = smov 0   ;;  %s3163_s30 = smov 0  }
   0xb LB: > { %3671 = sst [smem:[#allocation20_spill]] %s3040_s25  ;;  %s2300_s14 = sadd.s32 4294967295, %s3060_s30   ;;  %s3060_s30 = sphi %s3163_s30, %s30_s30   ;;  %s3056_s29 = sphi %s3161_s29, %s3696_s29   ;;  %s3052_s28 = sphi %s3159_s28, %s3691_s28   ;;  %s3048_s27 = sphi %s3157_s27, %s3695_s27   ;;  %s3044_s26 = sphi %s3155_s26, %s3694_s26   ;;  %s3040_s25 = sphi %s3153_s25, %s3693_s25  }
   0xc   : > { %3672 = sst [smem:[#allocation21_spill]] %s3048_s27  ;;  %s2301_s15 = sadd.s32 4294967294, %s3060_s30  }
   0xd   : > { %3673 = sst [smem:[#allocation22_spill]] %s3056_s29  ;;  %s42_s16 = sadd.s32 1, %s3056_s29 }
   0xe   : > { %s334_s17 = sadd.s32 1, %s3048_s27  ;;  %p44_p0 = scmp.ge.s32.totalorder %s42_s16, 2 }
   0xf   : > { %p344_p1 = scmp.ne.s32.totalorder %s3048_s27, %s3044_s26  ;;  %p345_p2 = scmp.eq.s32.totalorder %s2300_s14, 1 }
  0x10   : > { %p350_p3 = scmp.ne.s32.totalorder %s3044_s26, %s3040_s25  ;;  %s3698_s16 = smov (%p44_p0, %s42_s16), 0 }
  0x11   : > { %3674 = sst [smem:[#allocation23_spill]] %s3698_s16  ;;  %p3193_p4 = por %p345_p2, %p344_p1 }
  0x12   : > { %p351_p5 = scmp.eq.s32.totalorder %s2301_s15, 1  ;;  %s329_s19 = ssub.s32 %s3056_s29, %s3698_s16 }
  0x13   : > { %s3675_s18 = scalar_select %p3193_p4, 1, 0 }
  0x14   : > { %p2302_p6 = scmp.ge.s32.totalorder %s3060_s30, 1  ;;  %p332_p7 = scmp.eq.s32.totalorder %s329_s19, 0 }
  0x15   : > { %p3200_p8 = por %p351_p5, %p350_p3  ;;  %p358_p9 = scmp.lt.s32.totalorder %s3060_s30, 3 }
  0x16   : > { %s3206_s21 = scalar_select %p332_p7, %s3048_s27, %s334_s17  }
  0x17   : > { %s3676_s20 = scalar_select %p3200_p8, 1, 0 }
  0x18   : > { %3678 = sst [smem:[#allocation25_spill]] %s3206_s21  ;;  %p3208_p10 = pnand %p2302_p6, %p358_p9 }
  0x19   : > { %3677 = sst [smem:[#allocation24_spill]] %s3676_s20  ;;  %p3212_p11 = scmp.eq.s32.totalorder %s2300_s14, 0 }
  0x1a   : > { %p2621_p12 = pneg %p3208_p10  ;;  %s3062_s24 = smov [#allocation5]  }
  0x1b   : > { %s386_s15 = sshll.u32 %s3062_s24, 4  ;;  %s3063_s17 = smov [#allocation8]   ;;  %s387_s15 = int_to_ptr.vmem [resolvable:$true] %s386_s15 }
  0x1c   : > { %p3220_p13 = pnand %p3212_p11, %p2621_p12  ;;  %s412_s16 = sshll.u32 %s3063_s17, 4  ;;  %s413_s16 = int_to_ptr.vmem [resolvable:$true] %s412_s16 }
  0x1d   : > { %s2797_s29 = scalar_lea.vmem %s387_s15, 256  ;;  %p2805_p5 = scmp.lt.s32.totalorder %s387_s15, %s387_s15 }
  0x1e   : > { %p3226_p0 = pneg %p3220_p13  ;;  %p2798_p1 = scmp.ne.s32.totalorder %s387_s15, %s2797_s29 }
  0x1f   : > { %p2806_p6 = scmp.lt.s32.totalorder %s2797_s29, %s2797_s29 }
  0x20   : > { %p2800_p2 = pnand %p2798_p1, %p3226_p0 }
  0x21   : > { %p2807_p7 = por %p2806_p6, %p2805_p5 }
  0x22   : > { %p2801_p3 = pneg %p2800_p2 }
  0x24   : > { %p2808_p9 = pnand %p2807_p7, %p2801_p3 }
  0x26   : > { %2811 = shalt.err (!%p2808_p9)
}
  0x27   : > { %s3064_s24 = smov 64   ;;  %s3065_s17 = smov 4  }
  0x28   : > { %s3683_s4 = sld [smem:[#allocation27_spill]]  ;;  %s2823_s20 = scalar_lea.vmem %s413_s16, 256 }
  0x29   : > { %p2824_p12 = scmp.ne.s32.totalorder %s413_s16, %s2823_s20  ;;  %p2831_p5 = scmp.lt.s32.totalorder %s413_s16, %s413_s16 }
  0x2a   : > { %p2832_p3 = scmp.lt.s32.totalorder %s2823_s20, %s2823_s20 }
  0x2b   : > { %p2826_p1 = pnand %p2824_p12, %p3226_p0 }
  0x2c   : > { %p2833_p6 = por %p2832_p3, %p2831_p5 }
  0x2d   : > { %p2827_p2 = pneg %p2826_p1 }
  0x2e   : > { %2627 = dma.hbm_to_vmem [thread:$0]  (!%p3220_p13), %s3683_s4, 256, %s387_s15, [#allocation6], %s3064_s24, %s3064_s24, %s3065_s17  }
  0x2f   : > { %p2834_p7 = pnand %p2833_p6, %p2827_p2 }
  0x31   : > { %2837 = shalt.err (!%p2834_p7)
}
  0x32   : > { %2633 = dma.hbm_to_vmem [thread:$0]  (!%p3220_p13), %s3655_s6, 256, %s413_s16, [#allocation9], %s3064_s24, %s3064_s24, %s3065_s17  }
  0x33   : > { %s3066_s27 = smov [#allocation11]  }
  0x34   : > { %s438_s21 = sshll.u32 %s3066_s27, 4  ;;  %s439_s21 = int_to_ptr.vmem [resolvable:$true] %s438_s21 }
  0x35   : > { %s2849_s15 = scalar_lea.vmem %s439_s21, 256  ;;  %p2857_p2 = scmp.lt.s32.totalorder %s439_s21, %s439_s21 }
  0x36   : > { %p2850_p9 = scmp.ne.s32.totalorder %s439_s21, %s2849_s15  ;;  %p2858_p5 = scmp.lt.s32.totalorder %s2849_s15, %s2849_s15 }
  0x38   : > { %p2852_p12 = pnand %p2850_p9, %p3226_p0  ;;  %p2859_p3 = por %p2858_p5, %p2857_p2 }
  0x3a   : > { %p2853_p1 = pneg %p2852_p12 }
  0x3c   : > { %p2860_p6 = pnand %p2859_p3, %p2853_p1 }
  0x3e   : > { %2863 = shalt.err (!%p2860_p6)
}
  0x3f   : > { %2639 = dma.hbm_to_vmem [thread:$0]  (!%p3220_p13), %s3657_s8, 256, %s439_s21, [#allocation12], %s3064_s24, %s3064_s24, %s3065_s17  }
  0x40   : > { %s3067_s20 = smov [#allocation2]   ;;  %s3068_s27 = smov [#allocation7]  }
  0x41   : > { %s373_s29 = sshll.u32 %s3067_s20, 4  ;;  %s399_s4 = sshll.u32 %s3068_s27, 4  ;;  %s374_s29 = int_to_ptr.vmem [resolvable:$true] %s373_s29  ;;  %s400_s4 = int_to_ptr.vmem [resolvable:$true] %s399_s4 }
  0x42   : > { %s2875_s15 = scalar_lea.vmem %s374_s29, 256  ;;  %p2883_p1 = scmp.lt.s32.totalorder %s374_s29, %s374_s29 }
  0x43   : > { %p2876_p7 = scmp.ne.s32.totalorder %s374_s29, %s2875_s15  ;;  %p2884_p2 = scmp.lt.s32.totalorder %s2875_s15, %s2875_s15 }
  0x45   : > { %p2878_p9 = pnand %p2876_p7, %p3226_p0  ;;  %p2885_p5 = por %p2884_p2, %p2883_p1 }
  0x47   : > { %p2879_p12 = pneg %p2878_p9 }
  0x49   : > { %p2886_p3 = pnand %p2885_p5, %p2879_p12 }
  0x4b   : > { %2889 = shalt.err (!%p2886_p3)
}
  0x4c   : > { %s3684_s3 = sld [smem:[#allocation26_spill]]  ;;  %s2901_s16 = scalar_lea.vmem %s400_s4, 256 }
  0x4d   : > { %p2902_p6 = scmp.ne.s32.totalorder %s400_s4, %s2901_s16  ;;  %p2909_p8 = scmp.lt.s32.totalorder %s400_s4, %s400_s4 }
  0x4e   : > { %p2910_p4 = scmp.lt.s32.totalorder %s2901_s16, %s2901_s16 }
  0x4f   : > { %p2904_p7 = pnand %p2902_p6, %p3226_p0 }
  0x50   : > { %p2911_p1 = por %p2910_p4, %p2909_p8 }
  0x51   : > { %p2905_p9 = pneg %p2904_p7 }
  0x52   : > { %2624 = dma.hbm_to_vmem [thread:$0]  (!%p3220_p13), %s3684_s3, 256, %s374_s29, [#allocation3], %s3064_s24, %s3064_s24, %s3065_s17  }
  0x53   : > { %p2912_p12 = pnand %p2911_p1, %p2905_p9 }
  0x55   : > { %2915 = shalt.err (!%p2912_p12)
}
  0x56   : > { %2630 = dma.hbm_to_vmem [thread:$0]  (!%p3220_p13), %s3654_s5, 256, %s400_s4, [#allocation6], %s3064_s24, %s3064_s24, %s3065_s17  }
  0x57   : > { %s3069_s29 = smov [#allocation10]   ;;  %s3070_s21 = smov [#allocation13]  }
  0x58   : > { %s425_s15 = sshll.u32 %s3069_s29, 4  ;;  %s454_s25 = sshll.u32 %s3070_s21, 4  ;;  %s426_s15 = int_to_ptr.vmem [resolvable:$true] %s425_s15  ;;  %s455_s25 = int_to_ptr.vmem [resolvable:$true] %s454_s25 }
  0x59   : > { %s2927_s16 = scalar_lea.vmem %s426_s15, 256  ;;  %p2935_p5 = scmp.lt.s32.totalorder %s426_s15, %s426_s15 }
  0x5a   : > { %p2928_p4 = scmp.ne.s32.totalorder %s426_s15, %s2927_s16  ;;  %p2936_p3 = scmp.lt.s32.totalorder %s2927_s16, %s2927_s16 }
  0x5c   : > { %p2930_p8 = pnand %p2928_p4, %p3226_p0  ;;  %p2937_p6 = por %p2936_p3, %p2935_p5 }
  0x5e   : > { %p2931_p2 = pneg %p2930_p8 }
  0x60   : > { %p2938_p7 = pnand %p2937_p6, %p2931_p2 }
  0x62   : > { %2941 = shalt.err (!%p2938_p7)
}
  0x63   : > { %2636 = dma.hbm_to_vmem [thread:$0]  (!%p3220_p13), %s3656_s7, 256, %s426_s15, [#allocation9], %s3064_s24, %s3064_s24, %s3065_s17  }
  0x64   : > { %s2953_s27 = scalar_lea.vmem %s455_s25, 256  ;;  %p2961_p4 = scmp.lt.s32.totalorder %s455_s25, %s455_s25 }
  0x65   : > { %p2954_p9 = scmp.ne.s32.totalorder %s455_s25, %s2953_s27  ;;  %p2962_p8 = scmp.lt.s32.totalorder %s2953_s27, %s2953_s27 }
  0x67   : > { %p2956_p1 = pnand %p2954_p9, %p3226_p0  ;;  %p2963_p5 = por %p2962_p8, %p2961_p4 }
  0x69   : > { %p2957_p12 = pneg %p2956_p1 }
  0x6b   : > { %p2964_p2 = pnand %p2963_p5, %p2957_p12 }
  0x6d   : > { %2967 = shalt.err (!%p2964_p2)
}
  0x6e   : > { %s3071_s29 = smov 128   ;;  %s3072_s21 = smov 8  }
  0x6f   : > { %2642 = dma.hbm_to_vmem [thread:$0]  (!%p3220_p13), %s3659_s10, 256, %s455_s25, [#allocation12], %s3071_s29, %s3071_s29, %s3072_s21  }
  0x70   : > { %490 = sbr.rel (%p3208_p10) target bundleno = 4151 (0x1037), region = 72 }
  0x75   : > { %3019 = dma.done.wait (%p3212_p11), [#allocation3], 256  }
  0x76   : > { %3021 = vsyncadd (%p3212_p11), [#allocation3], 4294967040 }
  0x77   : > { %3023 = dma.done.wait (%p3212_p11), [#allocation6], 512  }
  0x78   : > { %3025 = vsyncadd (%p3212_p11), [#allocation6], 4294966784 }
  0x79   : > { %3027 = dma.done.wait (%p3212_p11), [#allocation9], 512  }
  0x7a   : > { %3029 = vsyncadd (%p3212_p11), [#allocation9], 4294966784 }
  0x7b   : > { %3031 = dma.done.wait (%p3212_p11), [#allocation12], 512  }
  0x7c   : > { %3033 = vsyncadd (%p3212_p11), [#allocation12], 4294966784  ;;  %p561_p10 = scmp.lt.s32.totalorder %s3052_s28, 1  ;;  %v3073_v0 = vmov 0.0   ;;  %vm3074_vm0 = vmmov 0   ;;  %v2730_v1 = vld [vmem:[%s3651_s2 + $0x8] sm:$0xff]   ;;  %v584_v7 = vlaneseq }
  0x7d   : > { %2427 = vmatprep.subr.bf16.mxu0 %v3073_v0  ;;  %2435 = vmatprep.subr.bf16.mxu1 %v3073_v0  ;;  %v2731_v2 = vld [vmem:[#allocation2 + $0x8] sm:$0xff]   ;;  %v2732_v3 = vld [vmem:[%s3651_s2] sm:$0xff]   ;;  %vm600_vm1 = vcmask 261120   ;;  %vm737_vm2 = vcmask 64512   ;;  %s3075_s27 = smov 120   ;;  %s3076_s29 = smov 112  }
  0x7e   : > { %2431 = vmatprep.mubr.msk.bf16.mxu0 %vm3074_vm0, %v3073_v0  ;;  %2439 = vmatprep.mubr.msk.bf16.mxu1 %vm3074_vm0, %v3073_v0  ;;  %s3323_s3 = scalar_select %p561_p10, %s3052_s28, 1  ;;  %v2733_v4 = vld [vmem:[#allocation2] sm:$0xff]   ;;  %v3351_v8 = vshrl.u32 %v584_v7, 7  ;;  %vm976_vm3 = vcmask 1043456   ;;  %vm1180_vm4 = vcmask 130048   ;;  %vm1182_vm5 = vcmask 195584  }
  0x7f   : > { %2428 = vmatpush3.bf16.msra.mxu0 %v2730_v1  ;;  %2436 = vmatpush3.bf16.msra.mxu1 %v2731_v2  ;;  %v3356_v10 = vld [vmem:[#allocation13] sm:$0xff]  ;;  %s3077_s21 = smov 104   ;;  %s3078_s16 = smov 96   ;;  %vm2065_vm6 = vcmask 523264  }
  0x80   : > { %s2320_s22 = sshll.u32 %s3323_s3, 3  ;;  %2429 = vmatprep.subr.bf16.mxu0 %v3073_v0  ;;  %2437 = vmatprep.subr.bf16.mxu1 %v3073_v0  ;;  %v3354_v9 = vsub.s32 0, %v3351_v8  ;;  %v3361_v11 = vld [vmem:[%s3660_s11] sm:$0x3]  ;;  %s3079_s23 = smov 8  }
  0x81   : > { %s564_s17 = scalar_lea.vmem %s3649_s0, %s2320_s22  ;;  %s3080_s19 = smov 16  }
  0x82   : > { %v3339_v5 = vld [vmem:[%s564_s17] sm:$0xff]  ;;  %v587_v12 = vrot.slane %v3356_v10, %v3354_v9  ;;  %v653_v13 = vrot.slane %v3361_v11, %v3354_v9  ;;  %s3081_s14 = smov 24   ;;  %s568_s15 = scalar_lea.vmem %s3650_s1, %s2320_s22 }
  0x83   : > { %v579_v6 = vpack.c.bf16 %v3339_v5, %v3339_v5  ;;  %2430 = vmatpush3.bf16.msra.mxu0 %v2732_v3  ;;  %2438 = vmatpush3.bf16.msra.mxu1 %v2733_v4  ;;  %s2366_s24 = sshll.u32 %s3052_s28, 7  ;;  %p3685_p13 = scmp.ne.s32.totalorder %s3675_s18, 0 }
  0x84   : > { %2443 = vmatprep.subr.bf16.mxu0 %v3073_v0  ;;  %2449 = vmatprep.subr.bf16.mxu1 %v3073_v0  ;;  %s2147_s25 = scalar_lea.hbm %s3662_s13, %s2366_s24 }
  0x86   : > { %2432 = vmatmul.mubr.msk.bf16.vlgmr.msra.gmra.mxu0 %vm600_vm1, %v579_v6  ;;  %2440 = vmatmul.mubr.msk.bf16.vlgmr.msra.gmra.mxu1 %vm600_vm1, %v579_v6 }
  0x87   : > { %2445 = vmatprep.mubr.msk.bf16.mxu0 %vm3074_vm0, %v3073_v0  ;;  %2451 = vmatprep.mubr.msk.bf16.mxu1 %vm3074_vm0, %v3073_v0 }
 0x146   : > { %v638_v14 = vpop.f32.mrf.mxu0  ;;  %v703_v16 = vpop.f32.mrf.mxu1 }
 0x147   : > { %v639_v15 = vadd.f32 %v638_v14, %v587_v12  ;;  %v704_v17 = vadd.f32 %v703_v16, %v653_v13 }
 0x148   : > { %v2433_v18 = vpop.f32.mrf.mxu0  ;;  %v2441_v20 = vpop.f32.mrf.mxu1 }
 0x149   : > { %v644_v19 = vmul.f32 0.35355338, %v639_v15  ;;  %720 = vrot.lane.b32.xlu0 %v704_v17, %s3075_s27  ;;  %v3368_v22 = vpack.c.bf16 %v704_v17, %v704_v17 }
 0x14a   : > { %v641_v21 = vpop.f32.mrf.mxu0  ;;  %v706_v23 = vpop.f32.mrf.mxu1 }
 0x14b   : > { %710 = vrot.lane.b32.xlu1 %v644_v19, %s3075_s27  ;;  %v742_v25 = vsel %vm737_vm2, %v3368_v22, 0  ;;  %v729_v27 = vpack.c.bf16 %v644_v19, %v644_v19 }
 0x14c   : > { %v2434_v24 = vpop.f32.mrf.mxu0  ;;  %v2442_v26 = vpop.f32.mrf.mxu1  ;;  %2444 = vmatpush3.bf16.xpose.msra.mxu0 %v742_v25 }
 0x14d   : > { %723 = vrot.lane.b32.xlu0 %v704_v17, %s3076_s29  ;;  %2455 = vmatprep.subr.bf16.mxu0 %v3073_v0 }
 0x14f   : > { %726 = vrot.lane.b32.xlu1 %v704_v17, %s3077_s21 }
 0x151   : > { %713 = vrot.lane.b32.xlu0 %v644_v19, %s3076_s29 }
 0x153   : > { %716 = vrot.lane.b32.xlu1 %v644_v19, %s3077_s21  ;;  %2446 = vmatmul.mubr.msk.bf16.vlgmr.msra.gmra.mxu0 %vm737_vm2, %v729_v27 }
 0x154   : > { %2457 = vmatprep.mubr.msk.bf16.mxu0 %vm3074_vm0, %v3073_v0 }
 0x1bb   : > { %v721_v28 = vpop.permute.xlu0 %720 }
 0x1bc   : > { %v3381_v29 = vpack.c.bf16 %v721_v28, %v721_v28 }
 0x1bd   : > { %v711_v30 = vpop.permute.xlu1 %710 }
 0x1be   : > { %v788_v31 = vsel %vm737_vm2, %v3381_v29, 0  ;;  %v730_v37 = vpack.c.bf16 %v711_v30, %v711_v30 }
 0x1bf   : > { %2450 = vmatpush3.bf16.xpose.msra.mxu1 %v788_v31  ;;  %v724_v32 = vpop.permute.xlu0 %723 }
 0x1c0   : > { %v3385_v33 = vpack.c.bf16 %v724_v32, %v724_v32  ;;  %2461 = vmatprep.subr.bf16.mxu1 %v3073_v0 }
 0x1c1   : > { %v727_v34 = vpop.permute.xlu1 %726 }
 0x1c2   : > { %v834_v35 = vsel %vm737_vm2, %v3385_v33, 0  ;;  %v3390_v36 = vpack.c.bf16 %v727_v34, %v727_v34 }
 0x1c3   : > { %2456 = vmatpush3.bf16.xpose.msra.mxu0 %v834_v35  ;;  %v714_v38 = vpop.permute.xlu0 %713 }
 0x1c4   : > { %2467 = vmatprep.subr.bf16.mxu0 %v3073_v0  ;;  %v880_v39 = vsel %vm737_vm2, %v3390_v36, 0  ;;  %v731_v40 = vpack.c.bf16 %v714_v38, %v714_v38 }
 0x1c5   : > { %v717_v41 = vpop.permute.xlu1 %716 }
 0x1c6   : > { %2452 = vmatmul.mubr.msk.bf16.vlgmr.msra.gmra.mxu1 %vm737_vm2, %v730_v37  ;;  %v732_v42 = vpack.c.bf16 %v717_v41, %v717_v41 }
 0x1c7   : > { %2462 = vmatpush3.bf16.xpose.msra.mxu1 %v880_v39  ;;  %2463 = vmatprep.mubr.msk.bf16.mxu1 %vm3074_vm0, %v3073_v0 }
 0x1c8   : > { %2473 = vmatprep.subr.bf16.mxu1 %v3073_v0 }
 0x1ca   : > { %2458 = vmatmul.mubr.msk.bf16.vlgmr.msra.gmra.mxu0 %vm737_vm2, %v731_v40 }
 0x1cb   : > { %2469 = vmatprep.mubr.msk.bf16.mxu0 %vm3074_vm0, %v3073_v0 }
 0x1ce   : > { %2464 = vmatmul.mubr.msk.bf16.vlgmr.msra.gmra.mxu1 %vm737_vm2, %v732_v42 }
 0x1cf   : > { %2475 = vmatprep.mubr.msk.bf16.mxu1 %vm3074_vm0, %v3073_v0 }
 0x213   : > { %v778_v43 = vpop.f32.mrf.mxu0 }
 0x214   : > { %v922_v44 = vsel %vm737_vm2, %v778_v43, -inf }
 0x215   : > { %923 = vmax.xlane.f32.xlu0 %v922_v44  ;;  %v2447_v45 = vpop.f32.mrf.mxu0 }
 0x217   : > { %v781_v46 = vpop.f32.mrf.mxu0 }
 0x219   : > { %v2448_v47 = vpop.f32.mrf.mxu0 }
 0x286   : > { %v824_v48 = vpop.f32.mrf.mxu1 }
 0x287   : > { %v925_v49 = vsel %vm737_vm2, %v824_v48, -inf }
 0x288   : > { %926 = vmax.xlane.f32.xlu1 %v925_v49  ;;  %v2453_v50 = vpop.f32.mrf.mxu1 }
 0x28a   : > { %v827_v51 = vpop.f32.mrf.mxu1  ;;  %v870_v52 = vpop.f32.mrf.mxu0 }
 0x28b   : > { %v928_v53 = vsel %vm737_vm2, %v870_v52, -inf }
 0x28c   : > { %929 = vmax.xlane.f32.xlu0 %v928_v53  ;;  %v2454_v54 = vpop.f32.mrf.mxu1  ;;  %v2459_v55 = vpop.f32.mrf.mxu0  ;;  %v2734_v53 = vld [vmem:[#allocation5 + $0x8] sm:$0xff]  }
 0x28d   : > { %v2735_v54 = vld [vmem:[#allocation5] sm:$0xff]  }
 0x28e   : > { %v873_v56 = vpop.f32.mrf.mxu0  ;;  %v916_v57 = vpop.f32.mrf.mxu1 }
 0x28f   : > { %v931_v58 = vsel %vm737_vm2, %v916_v57, -inf }
 0x290   : > { %v2460_v59 = vpop.f32.mrf.mxu0  ;;  %932 = vmax.xlane.f32.xlu0 %v931_v58  ;;  %v2465_v60 = vpop.f32.mrf.mxu1 }
 0x292   : > { %v919_v61 = vpop.f32.mrf.mxu1 }
 0x294   : > { %v2466_v62 = vpop.f32.mrf.mxu1 }
 0x299   : > { %971 = vrot.lane.b32.xlu1 %v3368_v22, %s3078_s16 }
 0x29e   : > { %v924_v63 = vpop.xlane.xlu0 %923 }
 0x29f   : > { %v934_v1 = vsub.f32 %v778_v43, %v924_v63 }
 0x2a1   : > { %v938_v2 = vmul.f32 1.442695, %v934_v1 }
 0x2a3   : > { %2748 = vpow2.f32 %v938_v2 }
 0x2b0   : > { %v2749_v3 = vpop.eup %2748 }
 0x2b1   : > { %v946_v4 = vsel %vm737_vm2, %v2749_v3, 0.0 }
 0x2bd   : > { %947 = vadd.xlane.f32.xlu1 %v946_v4 }
 0x311   : > { %v927_v6 = vpop.xlane.xlu1 %926 }
 0x312   : > { %v935_v7 = vsub.f32 %v824_v48, %v927_v6 }
 0x314   : > { %v940_v12 = vmul.f32 1.442695, %v935_v7 }
 0x315   : > { %v930_v13 = vpop.xlane.xlu0 %929  ;;  %v972_v14 = vpop.permute.xlu1 %971 }
 0x316   : > { %2750 = vpow2.f32 %v940_v12  ;;  %v936_v15 = vsub.f32 %v870_v52, %v930_v13  ;;  %v978_v16 = vsel %vm976_vm3, %v972_v14, 0 }
 0x317   : > { %2468 = vmatpush3.bf16.msra.mxu0 %v978_v16  ;;  %v3453_v16 = vsub.s32 1, %v3351_v8 }
 0x318   : > { %v942_v17 = vmul.f32 1.442695, %v936_v15  ;;  %2479 = vmatprep.subr.bf16.mxu0 %v3073_v0 }
 0x319   : > { %v933_v18 = vpop.xlane.xlu0 %932 }
 0x31a   : > { %2752 = vpow2.f32 %v942_v17  ;;  %v937_v19 = vsub.f32 %v916_v57, %v933_v18  ;;  %v1192_v17 = vrot.slane %v3356_v10, %v3453_v16 }
 0x31c   : > { %v944_v20 = vmul.f32 1.442695, %v937_v19 }
 0x31e   : > { %2754 = vpow2.f32 %v944_v20 }
 0x323   : > { %v2751_v21 = vpop.eup %2750 }
 0x324   : > { %v949_v22 = vsel %vm737_vm2, %v2751_v21, 0.0 }
 0x325   : > { %950 = vadd.xlane.f32.xlu0 %v949_v22 }
 0x327   : > { %v2753_v23 = vpop.eup %2752 }
 0x328   : > { %v952_v24 = vsel %vm737_vm2, %v2753_v23, 0.0 }
 0x329   : > { %953 = vadd.xlane.f32.xlu1 %v952_v24 }
 0x32b   : > { %v2755_v25 = vpop.eup %2754 }
 0x32c   : > { %v955_v26 = vsel %vm737_vm2, %v2755_v25, 0.0 }
 0x32d   : > { %956 = vadd.xlane.f32.xlu0 %v955_v26 }
 0x33a   : > { %1070 = vrot.lane.b32.xlu1 %v3385_v33, %s3078_s16 }
 0x33e   : > { %1119 = vrot.lane.b32.xlu1 %v3390_v36, %s3078_s16 }
 0x343   : > { %1021 = vrot.lane.b32.xlu0 %v3381_v29, %s3078_s16 }
 0x346   : > { %v948_v27 = vpop.xlane.xlu1 %947 }
 0x347   : > { %2756 = vrcp.f32 %v948_v27 }
 0x354   : > { %v2757_v28 = vpop.eup %2756 }
 0x355   : > { %v962_v30 = vmul.f32 %v2757_v28, %v2749_v3 }
 0x357   : > { %v966_v31 = vpack.c.bf16 %v962_v30, %v962_v30 }
 0x359   : > { %2470 = vmatmul.mubr.msk.bf16.vlgmr.msra.gmra.mxu0 %vm737_vm2, %v966_v31  ;;  %v2736_v31 = vld [vmem:[#allocation8 + $0x8] sm:$0xff]  }
 0x35a   : > { %2481 = vmatprep.mubr.msk.bf16.mxu0 %vm3074_vm0, %v3073_v0 }
 0x3ae   : > { %v951_v32 = vpop.xlane.xlu0 %950 }
 0x3af   : > { %2758 = vrcp.f32 %v951_v32  ;;  %v574_v32 = vld [vmem:[%s568_s15] sm:$0xff] }
 0x3b2   : > { %v954_v34 = vpop.xlane.xlu1 %953 }
 0x3b3   : > { %2760 = vrcp.f32 %v954_v34  ;;  %v1338_v34 = vpack.c.bf16 %v574_v32, %v574_v32 }
 0x3b6   : > { %v1071_v33 = vpop.permute.xlu1 %1070  ;;  %v957_v35 = vpop.xlane.xlu0 %956 }
 0x3b7   : > { %v1076_v36 = vsel %vm976_vm3, %v1071_v33, 0  ;;  %2762 = vrcp.f32 %v957_v35  ;;  %v2738_v33 = vld [vmem:[#allocation7 + $0x8] sm:$0xff]   ;;  %v2739_v35 = vld [vmem:[#allocation7] sm:$0xff]  }
 0x3b8   : > { %2480 = vmatpush3.bf16.msra.mxu0 %v1076_v36 }
 0x3b9   : > { %2491 = vmatprep.subr.bf16.mxu0 %v3073_v0 }
 0x3ba   : > { %v1022_v29 = vpop.permute.xlu0 %1021  ;;  %v1120_v40 = vpop.permute.xlu1 %1119 }
 0x3bb   : > { %v1027_v37 = vsel %vm976_vm3, %v1022_v29, 0  ;;  %v1125_v43 = vsel %vm976_vm3, %v1120_v40, 0 }
 0x3bc   : > { %v2759_v38 = vpop.eup %2758  ;;  %2474 = vmatpush3.bf16.msra.mxu1 %v1027_v37 }
 0x3bd   : > { %2485 = vmatprep.subr.bf16.mxu1 %v3073_v0  ;;  %v963_v39 = vmul.f32 %v2759_v38, %v2751_v21  ;;  %v1265_v38 = vsub.s32 4, %v3351_v8 }
 0x3bf   : > { %v967_v41 = vpack.c.bf16 %v963_v39, %v963_v39  ;;  %v1270_v39 = vsub.s32 5, %v3351_v8  ;;  %v1266_v40 = vrot.slane %v3356_v10, %v1265_v38 }
 0x3c0   : > { %v2761_v42 = vpop.eup %2760 }
 0x3c1   : > { %2476 = vmatmul.mubr.msk.bf16.vlgmr.msra.gmra.mxu1 %vm737_vm2, %v967_v41  ;;  %v964_v44 = vmul.f32 %v2761_v42, %v2753_v23 }
 0x3c2   : > { %2486 = vmatpush3.bf16.msra.mxu1 %v1125_v43  ;;  %2487 = vmatprep.mubr.msk.bf16.mxu1 %vm3074_vm0, %v3073_v0  ;;  %v1271_v43 = vrot.slane %v3356_v10, %v1270_v39 }
 0x3c3   : > { %v968_v45 = vpack.c.bf16 %v964_v44, %v964_v44  ;;  %2499 = vmatprep.subr.bf16.mxu1 %v3073_v0 }
 0x3c4   : > { %v2763_v46 = vpop.eup %2762 }
 0x3c5   : > { %2482 = vmatmul.mubr.msk.bf16.vlgmr.msra.gmra.mxu0 %vm737_vm2, %v968_v45  ;;  %v965_v47 = vmul.f32 %v2763_v46, %v2755_v25 }
 0x3c6   : > { %2495 = vmatprep.mubr.msk.bf16.mxu0 %vm3074_vm0, %v3073_v0  ;;  %2492 = vmatpush3.bf16.msra.mxu0 %v2734_v53 }
 0x3c7   : > { %v969_v48 = vpack.c.bf16 %v965_v47, %v965_v47  ;;  %2493 = vmatprep.subr.bf16.mxu0 %v3073_v0  ;;  %v1346_v47 = vrot.slane %v3361_v11, %v3453_v16 }
 0x3c9   : > { %2488 = vmatmul.mubr.msk.bf16.vlgmr.msra.gmra.mxu1 %vm737_vm2, %v969_v48 }
 0x3ca   : > { %2503 = vmatprep.mubr.msk.bf16.mxu1 %vm3074_vm0, %v3073_v0  ;;  %2494 = vmatpush3.bf16.msra.mxu0 %v2735_v54 }
 0x3cb   : > { %2507 = vmatprep.subr.bf16.mxu0 %v3073_v0  ;;  %2500 = vmatpush3.bf16.msra.mxu1 %v2738_v33 }
 0x3cc   : > { %2501 = vmatprep.subr.bf16.mxu1 %v3073_v0 }
 0x3cf   : > { %2502 = vmatpush3.bf16.msra.mxu1 %v2739_v35 }
 0x3d0   : > { %2515 = vmatprep.subr.bf16.mxu1 %v3073_v0 }
 0x419   : > { %v1014_v49 = vpop.f32.mrf.mxu0 }
 0x41b   : > { %v2471_v50 = vpop.f32.mrf.mxu0 }
 0x41d   : > { %v1017_v51 = vpop.f32.mrf.mxu0 }
 0x41f   : > { %v2472_v52 = vpop.f32.mrf.mxu0 }
 0x481   : > { %v1063_v55 = vpop.f32.mrf.mxu1 }
 0x482   : > { %1168 = vrot.lane.b32.xlu0 %v1063_v55, %s3079_s23 }
 0x483   : > { %v2477_v56 = vpop.f32.mrf.mxu1 }
 0x485   : > { %v1066_v57 = vpop.f32.mrf.mxu1  ;;  %v1112_v58 = vpop.f32.mrf.mxu0 }
 0x486   : > { %1172 = vrot.lane.b32.xlu1 %v1112_v58, %s3080_s19  ;;  %v1280_v57 = vsub.s32 2, %v3351_v8 }
 0x487   : > { %v2478_v59 = vpop.f32.mrf.mxu1  ;;  %v2483_v60 = vpop.f32.mrf.mxu0 }
 0x488   : > { %v1281_v58 = vrot.slane %v3356_v10, %v1280_v57 }
 0x489   : > { %v1115_v61 = vpop.f32.mrf.mxu0  ;;  %v1161_v62 = vpop.f32.mrf.mxu1 }
 0x48a   : > { %1176 = vrot.lane.b32.xlu0 %v1161_v62, %s3081_s14 }
 0x48b   : > { %v2484_v63 = vpop.f32.mrf.mxu0  ;;  %v2489_v1 = vpop.f32.mrf.mxu1 }
 0x48d   : > { %v1164_v2 = vpop.f32.mrf.mxu1 }
 0x48f   : > { %v2490_v3 = vpop.f32.mrf.mxu1 }
 0x4f4   : > { %v1169_v4 = vpop.permute.xlu0 %1168 }
 0x4f5   : > { %v1179_v7 = vsel %vm737_vm2, %v1014_v49, %v1169_v4 }
 0x4f8   : > { %v1173_v6 = vpop.permute.xlu1 %1172 }
 0x4f9   : > { %v1181_v12 = vsel %vm1180_vm4, %v1179_v7, %v1173_v6 }
 0x4fc   : > { %v1177_v13 = vpop.permute.xlu0 %1176 }
 0x4fd   : > { %v1183_v14 = vsel %vm1182_vm5, %v1181_v12, %v1177_v13 }
 0x4fe   : > { %v1184_v15 = vpack.c.bf16 %v1183_v14, %v1183_v14 }
 0x500   : > { %2496 = vmatmul.mubr.msk.bf16.vlgmr.msra.gmra.mxu0 %vm600_vm1, %v1184_v15 }
 0x501   : > { %2511 = vmatprep.mubr.msk.bf16.mxu0 %vm3074_vm0, %v3073_v0  ;;  %2508 = vmatpush3.bf16.msra.mxu0 %v2736_v31 }
 0x502   : > { %2509 = vmatprep.subr.bf16.mxu0 %v3073_v0 }
 0x5c0   : > { %v1242_v18 = vpop.f32.mrf.mxu0 }
 0x5c1   : > { %v1243_v19 = vadd.f32 %v1242_v18, %v1192_v17 }
 0x5c2   : > { %v2497_v20 = vpop.f32.mrf.mxu0 }
 0x5c3   : > { %v1248_v21 = vadd.f32 %v1243_v19, %v3339_v5  ;;  %v2737_v5 = vld [vmem:[#allocation8] sm:$0xff]  }
 0x5c4   : > { %v1245_v22 = vpop.f32.mrf.mxu0  ;;  %2510 = vmatpush3.bf16.msra.mxu0 %v2737_v5 }
 0x5c5   : > { %v1249_v23 = vsel %vm600_vm1, %v1248_v21, 0.0  ;;  %2521 = vmatprep.subr.bf16.mxu0 %v3073_v0 }
 0x5c6   : > { %1250 = vadd.xlane.f32.xlu1 %v1249_v23  ;;  %v2498_v24 = vpop.f32.mrf.mxu0 }
 0x5c7   : > { %2512 = vmatmul.mubr.msk.bf16.vlgmr.msra.gmra.mxu0 %vm600_vm1, %v1338_v34 }
 0x5c8   : > { %2523 = vmatprep.mubr.msk.bf16.mxu0 %vm3074_vm0, %v3073_v0 }
 0x64f   : > { %v1251_v25 = vpop.xlane.xlu1 %1250 }
 0x650   : > { %v1253_v26 = vmul.f32 0.03125, %v1251_v25 }
 0x652   : > { %v1254_v27 = vsub.f32 %v1248_v21, %v1253_v26 }
 0x654   : > { %v1255_v28 = vmul.f32 %v1254_v27, %v1254_v27 }
 0x656   : > { %v1256_v30 = vsel %vm600_vm1, %v1255_v28, 0.0 }
 0x657   : > { %1257 = vadd.xlane.f32.xlu0 %v1256_v30 }
 0x687   : > { %v1396_v48 = vpop.f32.mrf.mxu0 }
 0x688   : > { %v1397_v49 = vadd.f32 %v1396_v48, %v1346_v47 }
 0x689   : > { %v2513_v50 = vpop.f32.mrf.mxu0 }
 0x68a   : > { %1413 = vrot.lane.b32.xlu0 %v1397_v49, %s3075_s27  ;;  %1416 = vrot.lane.b32.xlu1 %v1397_v49, %s3076_s29  ;;  %v3488_v53 = vpack.c.bf16 %v1397_v49, %v1397_v49 }
 0x68b   : > { %v1399_v51 = vpop.f32.mrf.mxu0 }
 0x68c   : > { %v1434_v54 = vsel %vm737_vm2, %v3488_v53, 0 }
 0x68d   : > { %v2514_v52 = vpop.f32.mrf.mxu0 }
 0x68e   : > { %1419 = vrot.lane.b32.xlu0 %v1397_v49, %s3077_s21 }
 0x6e0   : > { %v1258_v36 = vpop.xlane.xlu0 %1257 }
 0x6e1   : > { %v1259_v29 = vmul.f32 0.03125, %v1258_v36 }
 0x6e3   : > { %v1260_v37 = vadd.f32 1e-05, %v1259_v29 }
 0x6e5   : > { %2764 = vrsqrt.f32 %v1260_v37 }
 0x6f2   : > { %v2765_v41 = vpop.eup %2764 }
 0x6f3   : > { %v1262_v42 = vmul.f32 %v2765_v41, %v1254_v27 }
 0x6f5   : > { %v1267_v44 = vmul.f32 %v1266_v40, %v1262_v42 }
 0x6f7   : > { %v3476_v45 = vadd.f32 %v1271_v43, %v1267_v44 }
 0x6f9   : > { %v1273_v46 = vpack.c.bf16 %v3476_v45, %v3476_v45 }
 0x6fb   : > { %2504 = vmatmul.mubr.msk.bf16.vlgmr.msra.gmra.mxu1 %vm600_vm1, %v1273_v46 }
 0x6fc   : > { %2517 = vmatprep.mubr.msk.bf16.mxu1 %vm3074_vm0, %v3073_v0  ;;  %2516 = vmatpush3.bf16.xpose.msra.mxu1 %v1434_v54  ;;  %v1414_v11 = vpop.permute.xlu0 %1413  ;;  %v1417_v59 = vpop.permute.xlu1 %1416 }
 0x6fd   : > { %2527 = vmatprep.subr.bf16.mxu1 %v3073_v0  ;;  %v3493_v55 = vpack.c.bf16 %v1414_v11, %v1414_v11  ;;  %v3502_v62 = vpack.c.bf16 %v1417_v59, %v1417_v59 }
 0x6ff   : > { %v1480_v56 = vsel %vm737_vm2, %v3493_v55, 0  ;;  %v1526_v4 = vsel %vm737_vm2, %v3502_v62, 0 }
 0x700   : > { %2522 = vmatpush3.bf16.xpose.msra.mxu0 %v1480_v56  ;;  %v1420_v7 = vpop.permute.xlu0 %1419 }
 0x701   : > { %2533 = vmatprep.subr.bf16.mxu0 %v3073_v0  ;;  %v3513_v12 = vpack.c.bf16 %v1420_v7, %v1420_v7 }
 0x703   : > { %v1572_v15 = vsel %vm737_vm2, %v3513_v12, 0 }
 0x7bb   : > { %v1331_v60 = vpop.f32.mrf.mxu1 }
 0x7bc   : > { %v1332_v61 = vadd.f32 %v1331_v60, %v1281_v58 }
 0x7bd   : > { %v2505_v63 = vpop.f32.mrf.mxu1 }
 0x7be   : > { %v1337_v1 = vmul.f32 0.35355338, %v1332_v61 }
 0x7bf   : > { %v1334_v2 = vpop.f32.mrf.mxu1 }
 0x7c0   : > { %v1422_v3 = vpack.c.bf16 %v1337_v1, %v1337_v1  ;;  %1409 = vrot.lane.b32.xlu0 %v1337_v1, %s3077_s21  ;;  %1403 = vrot.lane.b32.xlu1 %v1337_v1, %s3075_s27  ;;  %s3082_s27 = smov [#allocation14]  }
 0x7c1   : > { %v2506_v6 = vpop.f32.mrf.mxu1 }
 0x7c2   : > { %2518 = vmatmul.mubr.msk.bf16.vlgmr.msra.gmra.mxu1 %vm737_vm2, %v1422_v3 }
 0x7c3   : > { %2528 = vmatpush3.bf16.xpose.msra.mxu1 %v1526_v4  ;;  %2529 = vmatprep.mubr.msk.bf16.mxu1 %vm3074_vm0, %v3073_v0 }
 0x7c4   : > { %1406 = vrot.lane.b32.xlu1 %v1337_v1, %s3076_s29  ;;  %2539 = vmatprep.subr.bf16.mxu1 %v3073_v0  ;;  %s2972_s29 = sshll.u32 %s3082_s27, 4  ;;  %s2973_s29 = int_to_ptr.vmem [resolvable:$false] %s2972_s29 }
 0x7c5   : > { %s2974_s28 = scalar_lea.vmem %s2973_s29, 256 }
 0x832   : > { %v1404_v13 = vpop.permute.xlu1 %1403  ;;  %v1410_v19 = vpop.permute.xlu0 %1409 }
 0x833   : > { %v1423_v14 = vpack.c.bf16 %v1404_v13, %v1404_v13  ;;  %v1425_v20 = vpack.c.bf16 %v1410_v19, %v1410_v19 }
 0x835   : > { %2524 = vmatmul.mubr.msk.bf16.vlgmr.msra.gmra.mxu0 %vm737_vm2, %v1423_v14 }
 0x836   : > { %2534 = vmatpush3.bf16.xpose.msra.mxu0 %v1572_v15  ;;  %v1407_v17 = vpop.permute.xlu1 %1406  ;;  %2535 = vmatprep.mubr.msk.bf16.mxu0 %vm3074_vm0, %v3073_v0 }
 0x837   : > { %v1424_v18 = vpack.c.bf16 %v1407_v17, %v1407_v17  ;;  %2545 = vmatprep.subr.bf16.mxu0 %v3073_v0 }
 0x839   : > { %2530 = vmatmul.mubr.msk.bf16.vlgmr.msra.gmra.mxu1 %vm737_vm2, %v1424_v18 }
 0x83a   : > { %2541 = vmatprep.mubr.msk.bf16.mxu1 %vm3074_vm0, %v3073_v0 }
 0x83d   : > { %2536 = vmatmul.mubr.msk.bf16.vlgmr.msra.gmra.mxu0 %vm737_vm2, %v1425_v20 }
 0x83e   : > { %2547 = vmatprep.mubr.msk.bf16.mxu0 %vm3074_vm0, %v3073_v0 }
 0x882   : > { %v1470_v21 = vpop.f32.mrf.mxu1 }
 0x883   : > { %v1614_v22 = vsel %vm737_vm2, %v1470_v21, -inf }
 0x884   : > { %1615 = vmax.xlane.f32.xlu1 %v1614_v22  ;;  %v2519_v23 = vpop.f32.mrf.mxu1 }
 0x886   : > { %v1473_v24 = vpop.f32.mrf.mxu1 }
 0x888   : > { %v2520_v25 = vpop.f32.mrf.mxu1 }
 0x8f5   : > { %v1516_v26 = vpop.f32.mrf.mxu0 }
 0x8f6   : > { %v1617_v27 = vsel %vm737_vm2, %v1516_v26, -inf }
 0x8f7   : > { %1618 = vmax.xlane.f32.xlu0 %v1617_v27  ;;  %v2525_v28 = vpop.f32.mrf.mxu0 }
 0x8f9   : > { %v1519_v30 = vpop.f32.mrf.mxu0  ;;  %v1562_v31 = vpop.f32.mrf.mxu1 }
 0x8fa   : > { %v1620_v5 = vsel %vm737_vm2, %v1562_v31, -inf }
 0x8fb   : > { %v2526_v32 = vpop.f32.mrf.mxu0  ;;  %1621 = vmax.xlane.f32.xlu0 %v1620_v5  ;;  %v2531_v34 = vpop.f32.mrf.mxu1 }
 0x8fc   : > { %v2740_v32 = vld [vmem:[#allocation10 + $0x8] sm:$0xff]   ;;  %v2741_v34 = vld [vmem:[#allocation10] sm:$0xff]  }
 0x8fd   : > { %v1565_v33 = vpop.f32.mrf.mxu1  ;;  %v1608_v35 = vpop.f32.mrf.mxu0 }
 0x8fe   : > { %v1623_v36 = vsel %vm737_vm2, %v1608_v35, -inf }
 0x8ff   : > { %v2537_v29 = vpop.f32.mrf.mxu0  ;;  %1624 = vmax.xlane.f32.xlu1 %v1623_v36  ;;  %v2532_v37 = vpop.f32.mrf.mxu1 }
 0x901   : > { %v1611_v38 = vpop.f32.mrf.mxu0 }
 0x903   : > { %v2538_v39 = vpop.f32.mrf.mxu0 }
 0x90d   : > { %v1616_v40 = vpop.xlane.xlu1 %1615 }
 0x90e   : > { %v1626_v41 = vsub.f32 %v1470_v21, %v1616_v40 }
 0x910   : > { %1712 = vrot.lane.b32.xlu1 %v3493_v55, %s3078_s16  ;;  %v1630_v42 = vmul.f32 1.442695, %v1626_v41 }
 0x911   : > { %1663 = vrot.lane.b32.xlu0 %v3488_v53, %s3078_s16 }
 0x912   : > { %2766 = vpow2.f32 %v1630_v42 }
 0x91f   : > { %v2767_v43 = vpop.eup %2766 }
 0x920   : > { %v1638_v44 = vsel %vm737_vm2, %v2767_v43, 0.0 }
 0x930   : > { %1639 = vadd.xlane.f32.xlu0 %v1638_v44 }
 0x980   : > { %v1619_v46 = vpop.xlane.xlu0 %1618 }
 0x981   : > { %v1627_v47 = vsub.f32 %v1516_v26, %v1619_v46 }
 0x983   : > { %v1632_v48 = vmul.f32 1.442695, %v1627_v47 }
 0x984   : > { %v1622_v49 = vpop.xlane.xlu0 %1621 }
 0x985   : > { %2768 = vpow2.f32 %v1632_v48  ;;  %v1628_v50 = vsub.f32 %v1562_v31, %v1622_v49 }
 0x987   : > { %v1634_v51 = vmul.f32 1.442695, %v1628_v50 }
 0x988   : > { %v1625_v52 = vpop.xlane.xlu1 %1624  ;;  %v1664_v54 = vpop.permute.xlu0 %1663 }
 0x989   : > { %2770 = vpow2.f32 %v1634_v51  ;;  %v1629_v11 = vsub.f32 %v1608_v35, %v1625_v52  ;;  %v1669_v53 = vsel %vm976_vm3, %v1664_v54, 0  ;;  %v1880_v54 = vsub.s32 3, %v3351_v8 }
 0x98a   : > { %2540 = vmatpush3.bf16.msra.mxu1 %v1669_v53 }
 0x98b   : > { %v1636_v55 = vmul.f32 1.442695, %v1629_v11  ;;  %2551 = vmatprep.subr.bf16.mxu1 %v3073_v0  ;;  %v1881_v11 = vrot.slane %v3356_v10, %v1880_v54 }
 0x98c   : > { %v1713_v56 = vpop.permute.xlu1 %1712 }
 0x98d   : > { %2772 = vpow2.f32 %v1636_v55  ;;  %v1718_v58 = vsel %vm976_vm3, %v1713_v56, 0 }
 0x98e   : > { %2546 = vmatpush3.bf16.msra.mxu0 %v1718_v58 }
 0x98f   : > { %2557 = vmatprep.subr.bf16.mxu0 %v3073_v0 }
 0x992   : > { %v2769_v59 = vpop.eup %2768 }
 0x993   : > { %v1641_v60 = vsel %vm737_vm2, %v2769_v59, 0.0 }
 0x994   : > { %1642 = vadd.xlane.f32.xlu1 %v1641_v60 }
 0x996   : > { %v2771_v61 = vpop.eup %2770 }
 0x997   : > { %v1644_v63 = vsel %vm737_vm2, %v2771_v61, 0.0 }
 0x998   : > { %1645 = vadd.xlane.f32.xlu0 %v1644_v63 }
 0x99a   : > { %v2773_v1 = vpop.eup %2772 }
 0x99b   : > { %v1647_v2 = vsel %vm737_vm2, %v2773_v1, 0.0 }
 0x99c   : > { %1648 = vadd.xlane.f32.xlu1 %v1647_v2 }
 0x9ad   : > { %1761 = vrot.lane.b32.xlu1 %v3502_v62, %s3078_s16 }
 0x9ae   : > { %1810 = vrot.lane.b32.xlu0 %v3513_v12, %s3078_s16 }
 0x9b9   : > { %v1640_v3 = vpop.xlane.xlu0 %1639 }
 0x9ba   : > { %2774 = vrcp.f32 %v1640_v3 }
 0x9c7   : > { %v2775_v4 = vpop.eup %2774 }
 0x9c8   : > { %v1654_v6 = vmul.f32 %v2775_v4, %v2767_v43 }
 0x9ca   : > { %v1658_v7 = vpack.c.bf16 %v1654_v6, %v1654_v6  ;;  %v2742_v6 = vld [vmem:[#allocation11 + $0x8] sm:$0xff]  }
 0x9cc   : > { %2542 = vmatmul.mubr.msk.bf16.vlgmr.msra.gmra.mxu1 %vm737_vm2, %v1658_v7  ;;  %v2743_v7 = vld [vmem:[#allocation11] sm:$0xff]  }
 0x9cd   : > { %2553 = vmatprep.mubr.msk.bf16.mxu1 %vm3074_vm0, %v3073_v0 }
 0xa1d   : > { %v1643_v13 = vpop.xlane.xlu1 %1642 }
 0xa1e   : > { %2776 = vrcp.f32 %v1643_v13  ;;  %v2745_v13 = vld [vmem:[%s3658_s9 + $0x10] sm:$0xff]  }
 0xa21   : > { %v1646_v14 = vpop.xlane.xlu0 %1645 }
 0xa22   : > { %2778 = vrcp.f32 %v1646_v14 }
 0xa25   : > { %v1649_v15 = vpop.xlane.xlu1 %1648  ;;  %v1811_v19 = vpop.permute.xlu0 %1810 }
 0xa26   : > { %2780 = vrcp.f32 %v1649_v15  ;;  %v1816_v22 = vsel %vm976_vm3, %v1811_v19, 0 }
 0xa29   : > { %v1762_v62 = vpop.permute.xlu1 %1761 }
 0xa2a   : > { %v1767_v17 = vsel %vm976_vm3, %v1762_v62, 0 }
 0xa2b   : > { %v2777_v12 = vpop.eup %2776  ;;  %2552 = vmatpush3.bf16.msra.mxu1 %v1767_v17  ;;  %v1953_v17 = vsub.s32 6, %v3351_v8 }
 0xa2c   : > { %v1655_v18 = vmul.f32 %v2777_v12, %v2769_v59  ;;  %2563 = vmatprep.subr.bf16.mxu1 %v3073_v0  ;;  %v1958_v12 = vsub.s32 7, %v3351_v8 }
 0xa2e   : > { %v1659_v20 = vpack.c.bf16 %v1655_v18, %v1655_v18  ;;  %v1954_v18 = vrot.slane %v3356_v10, %v1953_v17 }
 0xa2f   : > { %v2779_v21 = vpop.eup %2778 }
 0xa30   : > { %2548 = vmatmul.mubr.msk.bf16.vlgmr.msra.gmra.mxu0 %vm737_vm2, %v1659_v20  ;;  %v1656_v23 = vmul.f32 %v2779_v21, %v2771_v61  ;;  %v1959_v21 = vrot.slane %v3356_v10, %v1958_v12  ;;  %v2356_v10 = vld [vmem:[%s3661_s12] ss:$0 sm:$0xff] }
 0xa31   : > { %2558 = vmatpush3.bf16.msra.mxu0 %v1816_v22  ;;  %2559 = vmatprep.mubr.msk.bf16.mxu0 %vm3074_vm0, %v3073_v0 }
 0xa32   : > { %v1660_v24 = vpack.c.bf16 %v1656_v23, %v1656_v23  ;;  %2571 = vmatprep.subr.bf16.mxu0 %v3073_v0 }
 0xa33   : > { %v2781_v25 = vpop.eup %2780 }
 0xa34   : > { %2554 = vmatmul.mubr.msk.bf16.vlgmr.msra.gmra.mxu1 %vm737_vm2, %v1660_v24  ;;  %v1657_v26 = vmul.f32 %v2781_v25, %v2773_v1  ;;  %v2746_v25 = vld [vmem:[%s3658_s9 + $0x8] sm:$0xff]  }
 0xa35   : > { %2567 = vmatprep.mubr.msk.bf16.mxu1 %vm3074_vm0, %v3073_v0  ;;  %2564 = vmatpush3.bf16.msra.mxu1 %v2740_v32 }
 0xa36   : > { %v1661_v27 = vpack.c.bf16 %v1657_v26, %v1657_v26  ;;  %2565 = vmatprep.subr.bf16.mxu1 %v3073_v0  ;;  %v2747_v26 = vld [vmem:[%s3658_s9] sm:$0xff]  }
 0xa38   : > { %2560 = vmatmul.mubr.msk.bf16.vlgmr.msra.gmra.mxu0 %vm737_vm2, %v1661_v27 }
 0xa39   : > { %2575 = vmatprep.mubr.msk.bf16.mxu0 %vm3074_vm0, %v3073_v0  ;;  %2566 = vmatpush3.bf16.msra.mxu1 %v2741_v34 }
 0xa3a   : > { %2579 = vmatprep.subr.bf16.mxu1 %v3073_v0  ;;  %2572 = vmatpush3.bf16.msra.mxu0 %v2742_v6 }
 0xa3b   : > { %2573 = vmatprep.subr.bf16.mxu0 %v3073_v0 }
 0xa3e   : > { %2574 = vmatpush3.bf16.msra.mxu0 %v2743_v7 }
 0xa8c   : > { %v1705_v28 = vpop.f32.mrf.mxu1 }
 0xa8e   : > { %v2543_v30 = vpop.f32.mrf.mxu1 }
 0xa90   : > { %v1708_v31 = vpop.f32.mrf.mxu1 }
 0xa92   : > { %v2544_v5 = vpop.f32.mrf.mxu1 }
 0xaf0   : > { %v1754_v33 = vpop.f32.mrf.mxu0 }
 0xaf1   : > { %1859 = vrot.lane.b32.xlu1 %v1754_v33, %s3079_s23  ;;  %v576_v33 = vld [vmem:[#allocation13 + $0x8] sm:$0xff] }
 0xaf2   : > { %v2549_v35 = vpop.f32.mrf.mxu0 }
 0xaf4   : > { %v1757_v36 = vpop.f32.mrf.mxu0  ;;  %v1803_v29 = vpop.f32.mrf.mxu1 }
 0xaf5   : > { %1863 = vrot.lane.b32.xlu0 %v1803_v29, %s3080_s19  ;;  %s558_s19 = sand.u32 1, %s3044_s26  }
 0xaf6   : > { %v2550_v37 = vpop.f32.mrf.mxu0  ;;  %v2555_v38 = vpop.f32.mrf.mxu1  ;;  %s2135_s4 = scalar_lea.sflag [#allocation4], %s558_s19 }
 0xaf8   : > { %v1806_v39 = vpop.f32.mrf.mxu1  ;;  %v1852_v40 = vpop.f32.mrf.mxu0 }
 0xaf9   : > { %1867 = vrot.lane.b32.xlu1 %v1852_v40, %s3081_s14  ;;  %s2319_s14 = sshll.u32 %s558_s19, 3 }
 0xafa   : > { %v2556_v41 = vpop.f32.mrf.mxu1  ;;  %v2561_v42 = vpop.f32.mrf.mxu0  ;;  %s560_s17 = scalar_lea.vmem [#allocation14], %s2319_s14 }
 0xafb   : > { %s2149_s15 = sshll.u32 %s560_s17, 4  ;;  %s2150_s15 = int_to_ptr.vmem [resolvable:$true] %s2149_s15 }
 0xafc   : > { %v1855_v43 = vpop.f32.mrf.mxu0  ;;  %s2968_s20 = scalar_lea.vmem %s2150_s15, 128  ;;  %p2975_p6 = scmp.lt.s32.totalorder %s2150_s15, %s2973_s29 }
 0xafd   : > { %p2969_p11 = scmp.ne.s32.totalorder %s2150_s15, %s2968_s20  ;;  %p2976_p7 = scmp.lt.s32.totalorder %s2974_s28, %s2968_s20 }
 0xafe   : > { %v2562_v44 = vpop.f32.mrf.mxu0 }
 0xaff   : > { %p2970_p0 = pnand %p2969_p11, %p3685_p13  ;;  %p2977_p9 = por %p2976_p7, %p2975_p6 }
 0xb01   : > { %p2971_p3 = pneg %p2970_p0 }
 0xb03   : > { %p2978_p1 = pnand %p2977_p9, %p2971_p3 }
 0xb63   : > { %v1860_v46 = vpop.permute.xlu1 %1859 }
 0xb64   : > { %v1870_v48 = vsel %vm737_vm2, %v1705_v28, %v1860_v46 }
 0xb67   : > { %v1864_v47 = vpop.permute.xlu0 %1863 }
 0xb68   : > { %v1871_v49 = vsel %vm1180_vm4, %v1870_v48, %v1864_v47  ;;  %v2126_v48 = vrot.slane %v576_v33, %v3354_v9 }
 0xb6b   : > { %v1868_v50 = vpop.permute.xlu1 %1867 }
 0xb6c   : > { %v1872_v51 = vsel %vm1182_vm5, %v1871_v49, %v1868_v50  ;;  %v2131_v50 = vrot.slane %v576_v33, %v3453_v16 }
 0xb6d   : > { %v1873_v52 = vpack.c.bf16 %v1872_v51, %v1872_v51 }
 0xb6f   : > { %2568 = vmatmul.mubr.msk.bf16.vlgmr.msra.gmra.mxu1 %vm600_vm1, %v1873_v52 }
 0xb70   : > { %2587 = vmatprep.mubr.msk.bf16.mxu1 %vm3074_vm0, %v3073_v0 }
 0xc2f   : > { %v1931_v53 = vpop.f32.mrf.mxu1 }
 0xc30   : > { %v1932_v55 = vadd.f32 %v1931_v53, %v1881_v11 }
 0xc31   : > { %v2569_v56 = vpop.f32.mrf.mxu1 }
 0xc32   : > { %v1937_v58 = vadd.f32 %v1932_v55, %v3476_v45  ;;  %v2744_v45 = vld [vmem:[%s3658_s9 + $0x18] sm:$0xff]  }
 0xc33   : > { %v1934_v59 = vpop.f32.mrf.mxu1  ;;  %2580 = vmatpush3.bf16.msra.mxu1 %v2744_v45 }
 0xc34   : > { %v1938_v60 = vsel %vm600_vm1, %v1937_v58, 0.0  ;;  %2581 = vmatprep.subr.bf16.mxu1 %v3073_v0 }
 0xc35   : > { %1939 = vadd.xlane.f32.xlu0 %v1938_v60  ;;  %v2570_v61 = vpop.f32.mrf.mxu1 }
 0xc37   : > { %2582 = vmatpush3.bf16.msra.mxu1 %v2745_v13 }
 0xc38   : > { %2583 = vmatprep.subr.bf16.mxu1 %v3073_v0 }
 0xc3b   : > { %2584 = vmatpush3.bf16.msra.mxu1 %v2746_v25 }
 0xc3c   : > { %2585 = vmatprep.subr.bf16.mxu1 %v3073_v0  ;;  %v2040_v0 = vrot.slane %v576_v33, %v1280_v57 }
 0xc3f   : > { %2586 = vmatpush3.bf16.msra.mxu1 %v2747_v26 }
 0xcbe   : > { %v1940_v63 = vpop.xlane.xlu0 %1939 }
 0xcbf   : > { %v1941_v1 = vmul.f32 0.03125, %v1940_v63 }
 0xcc1   : > { %v1942_v2 = vsub.f32 %v1937_v58, %v1941_v1 }
 0xcc3   : > { %v1943_v3 = vmul.f32 %v1942_v2, %v1942_v2 }
 0xcc5   : > { %v1944_v4 = vsel %vm600_vm1, %v1943_v3, 0.0 }
 0xcc6   : > { %1945 = vadd.xlane.f32.xlu1 %v1944_v4 }
 0xd4f   : > { %v1946_v14 = vpop.xlane.xlu1 %1945 }
 0xd50   : > { %v1947_v15 = vmul.f32 0.03125, %v1946_v14 }
 0xd52   : > { %v1948_v62 = vadd.f32 1e-05, %v1947_v15 }
 0xd54   : > { %2782 = vrsqrt.f32 %v1948_v62 }
 0xd61   : > { %v2783_v19 = vpop.eup %2782 }
 0xd62   : > { %v1950_v20 = vmul.f32 %v2783_v19, %v1942_v2 }
 0xd64   : > { %v1955_v22 = vmul.f32 %v1954_v18, %v1950_v20 }
 0xd66   : > { %v1960_v23 = vadd.f32 %v1959_v21, %v1955_v22 }
 0xd68   : > { %v1961_v24 = vpack.c.bf16 %v1960_v23, %v1960_v23 }
 0xd6a   : > { %2576 = vmatmul.mubr.msk.bf16.vlgmr.msra.gmra.mxu0 %vm600_vm1, %v1961_v24 }
 0xe2a   : > { %v2021_v27 = vpop.f32.mrf.mxu0 }
 0xe2b   : > { %v2022_v28 = vadd.f32 %v2356_v10, %v2021_v27 }
 0xe2c   : > { %v2577_v30 = vpop.f32.mrf.mxu0 }
 0xe2d   : > { %v2027_v31 = vmax.f32 %v2022_v28, 0.0 }
 0xe2e   : > { %v2024_v5 = vpop.f32.mrf.mxu0 }
 0xe2f   : > { %v2028_v32 = vpack.c.bf16 %v2027_v31, %v2027_v31 }
 0xe30   : > { %v2578_v34 = vpop.f32.mrf.mxu0 }
 0xe31   : > { %2588 = vmatmul.mubr.msk.bf16.vlgmr.msra.gmra.mxu1 %vm2065_vm6, %v2028_v32 }
 0xef1   : > { %v2103_v35 = vpop.f32.mrf.mxu1 }
 0xef2   : > { %v2104_v36 = vadd.f32 %v2103_v35, %v2040_v0 }
 0xef3   : > { %v2589_v29 = vpop.f32.mrf.mxu1 }
 0xef4   : > { %v2109_v37 = vadd.f32 %v2104_v36, %v1960_v23 }
 0xef5   : > { %v2106_v38 = vpop.f32.mrf.mxu1 }
 0xef6   : > { %v2110_v39 = vsel %vm600_vm1, %v2109_v37, 0.0 }
 0xef7   : > { %2111 = vadd.xlane.f32.xlu0 %v2110_v39  ;;  %v2590_v40 = vpop.f32.mrf.mxu1 }
 0xf80   : > { %v2112_v41 = vpop.xlane.xlu0 %2111 }
 0xf81   : > { %v2113_v42 = vmul.f32 0.03125, %v2112_v41 }
 0xf83   : > { %v2114_v43 = vsub.f32 %v2109_v37, %v2113_v42 }
 0xf85   : > { %v2115_v44 = vmul.f32 %v2114_v43, %v2114_v43 }
 0xf87   : > { %v2116_v46 = vsel %vm600_vm1, %v2115_v44, 0.0 }
 0xf88   : > { %2117 = vadd.xlane.f32.xlu0 %v2116_v46 }
0x1011   : > { %v2118_v8 = vpop.xlane.xlu0 %2117 }
0x1012   : > { %v2119_v57 = vmul.f32 0.03125, %v2118_v8 }
0x1014   : > { %v2120_v47 = vadd.f32 1e-05, %v2119_v57 }
0x1016   : > { %2784 = vrsqrt.f32 %v2120_v47 }
0x1023   : > { %v2785_v49 = vpop.eup %2784 }
0x1024   : > { %v2122_v51 = vmul.f32 %v2785_v49, %v2114_v43 }
0x1026   : > { %v2127_v52 = vmul.f32 %v2126_v48, %v2122_v51 }
0x1028   : > { %v2132_v54 = vadd.f32 %v2131_v50, %v2127_v52 }
0x102a   : > { %2133 = vst.msk [vmem:[%s560_s17] sm:$0xff] %vm600_vm1, %v2132_v54 }
0x102b   : > { %2981 = shalt.err (!%p2978_p1)
}
0x102c   : > { %s2982_s21 = scalar_lea.hbm %s2147_s25, 128  ;;  %s2986_s19 = scalar_lea.hbm %s3662_s13, 256 }
0x102d   : > { %p2983_p12 = scmp.ne.s32.totalorder %s2147_s25, %s2982_s21  ;;  %p2987_p5 = scmp.lt.s32.totalorder %s2147_s25, %s3662_s13 }
0x102e   : > { %p2988_p2 = scmp.lt.s32.totalorder %s2986_s19, %s2982_s21 }
0x102f   : > { %p2984_p4 = pnand %p2983_p12, %p3685_p13 }
0x1030   : > { %p2989_p10 = por %p2988_p2, %p2987_p5 }
0x1031   : > { %p2985_p8 = pneg %p2984_p4 }
0x1033   : > { %p2990_p11 = pnand %p2989_p10, %p2985_p8 }
0x1035   : > { %2993 = shalt.err (!%p2990_p11)
}
0x1036   : > { %2619 = dma.vmem_to_hbm [thread:$0]  (%p3685_p13), %s2150_s15, 128, %s2147_s25, %s2135_s4  }
0x1037 PF: > { %s3686_s17 = sld [smem:[#allocation20_spill]]  ;;  %p2661_p0 = scmp.ge.s32.totalorder %s3060_s30, 2 }
0x1038   : > { %s3687_s3 = sld [smem:[#allocation24_spill]] }
0x103d   : > { %s2161_s22 = sand.u32 1, %s3686_s17  }
0x103e   : > { %p3688_p3 = scmp.ne.s32.totalorder %s3687_s3, 0  ;;  %s2162_s20 = scalar_lea.sflag [#allocation4], %s2161_s22 }
0x1040   : > { %p2644_p6 = pnand %p2661_p0, %p3688_p3 }
0x1042   : > { %p2645_p7 = pneg %p2644_p6 }
0x1044   : > { %3035 = dma.done.wait (%p2645_p7), %s2162_s20, 128  }
0x1045   : > { %3037 = vsyncadd (%p2645_p7), %s2162_s20, 4294967168  ;;  %s30_s30 = sadd.s32 1, %s3060_s30   ;;  %s3689_s27 = sld [smem:[#allocation21_spill]] }
0x1046   : > { %p27_p9 = scmp.ge.s32.totalorder %s30_s30, 4   ;;  %s3690_s29 = sld [smem:[#allocation25_spill]] }
0x1047   : > { %s3691_s28 = sld [smem:[#allocation22_spill]]  ;;  %s3693_s25 = smov %s3044_s26 }
0x1048   : > { %s3692_s18 = sld [smem:[#allocation23_spill]] }
0x104a   :  { %29 = sbr.rel (!%p27_p9) target bundleno = 11 (0xb), region = 140 }
0x104b   : > { %s3694_s26 = smov %s3689_s27 }
0x104c   : > { %s3695_s27 = smov %s3690_s29 }
0x104e   : > { %s3696_s29 = smov %s3692_s18 }
0x104f   :  { %2167 = vsyncpa [#allocation3], 1 }
0x1050   :  { %2169 = vsyncpa [#allocation3 + $0x1], 1 }
0x1051   :  { %2170 = vsyncpa [#allocation6], 1 }
0x1052   :  { %2171 = vsyncpa [#allocation9], 1 }
0x1053   :  { %2172 = vsyncpa [#allocation12], 1 }
0x1054   :  { %2173 = vsyncpa [#allocation4], 1 }
0x1055   :  { %2175 = vsyncpa [#allocation4 + $0x1], 1 }

</bundles_post_ra>
